<compile_context>
chip_gen: v6e
topology: v6e:2x2x1
jax: 0.10.0
libtpu: 0.0.40
codegen_flags: <defaults>
</compile_context>

<pallas_src>
import math
from functools import partial

import jax
import jax.numpy as jnp
import numpy as np
from jax.experimental import pallas as pl
from jax.experimental.pallas import tpu as pltpu

# ----------------------------- config --------------------------------------
B = 2          # batch
L = 8          # sequence length
D = 32         # model dim
H = 4          # heads
HD = D // H    # head dim
BL = B * L     # flattened rows
N_LAYERS = 2
EPS = 1e-5

# Perf flags (each documented above).  Numerics:
#   MATMUL_BF16=True  -> bf16 MXU operands, f32 accumulate: ~1e-2-scale drift
#                        vs the pure-f32 reference over 2 layers.
#   APPROX_RECIP=True -> EUP approximate reciprocal in the softmax denominator.
# With both False the kernel matches the f32 reference to <=1e-4.
MATMUL_BF16 = True
APPROX_RECIP = True
SUBTRACT_MAX = False   # safe: no masked rows and LN-bounded scores (see above)

DOT_DTYPE = jnp.bfloat16 if MATMUL_BF16 else jnp.float32
if MATMUL_BF16:
    TOL = 4e-2
elif APPROX_RECIP:
    TOL = 1e-2
else:
    TOL = 1e-4


# --------------------------- Pallas kernel ----------------------------------
def _encoder_kernel(x_ref, wqkv_ref, bqkv_ref, wo_ref, lnv_ref, *rest,
                    apply_final_norm: bool):
    """Full encoder: N_LAYERS x (MHA + residual + LN), then optional final LN."""
    if apply_final_norm:
        fin_ref, o_ref, ctx_ref = rest
    else:
        o_ref, ctx_ref = rest

    x = x_ref[...]                                           # (BL, D) f32

    def layer_norm(y, gamma, beta):
        mean = jnp.mean(y, axis=-1, keepdims=True)
        var = jnp.mean((y - mean) ** 2, axis=-1, keepdims=True)
        return (y - mean) * jax.lax.rsqrt(var + EPS) * gamma + beta

    for layer in range(N_LAYERS):                  # static unroll (2 layers)
        w_qkv = wqkv_ref[layer]                    # (D, 3D)  bf16/f32
        b_qkv = bqkv_ref[layer]                    # (1, 3D)  f32 (Q part pre-scaled)
        w_o = wo_ref[layer]                        # (D, D)   bf16/f32
        vecs = lnv_ref[layer]                      # (3, D)   f32: [b_o, gamma, beta]
        b_o, gamma, beta = vecs[0:1], vecs[1:2], vecs[2:3]

        # Fused QKV projection: one MXU matmul, bf16 operands, f32 accumulate.
        # 1/sqrt(HD) is already folded into the Q columns of w_qkv / b_qkv.
        qkv = jnp.dot(x.astype(DOT_DTYPE), w_qkv,
                      preferred_element_type=jnp.float32) + b_qkv   # (BL,3D) f32

        for h in range(H):                         # static unroll (4 heads)
            # Per-batch (flash-style) scores: no (BL,BL) cross-batch block and
            # no additive mask.  Reshapes only split/merge the leading
            # (sublane) dim at an 8-row boundary; the lane dim is untouched.
            q_h = qkv[:, h * HD:(h + 1) * HD].reshape(B, L, HD)
            k_h = qkv[:, D + h * HD:D + (h + 1) * HD].reshape(B, L, HD)
            v_h = qkv[:, 2 * D + h * HD:2 * D + (h + 1) * HD].reshape(B, L, HD)

            s = jnp.einsum('bqd,bkd->bqk',
                           q_h.astype(DOT_DTYPE), k_h.astype(DOT_DTYPE),
                           preferred_element_type=jnp.float32)      # (B,L,L)
            if SUBTRACT_MAX:
                s = s - jnp.max(s, axis=-1, keepdims=True)
            p = jnp.exp(s)
            p = p * pl.reciprocal(jnp.sum(p, axis=-1, keepdims=True),
                                  approx=APPROX_RECIP)
            ctx_h = jnp.einsum('bqk,bkd->bqd',
                               p.astype(DOT_DTYPE), v_h.astype(DOT_DTYPE),
                               preferred_element_type=jnp.float32)  # (B,L,HD)

            # Assemble all heads into one (BL, D) buffer (static lane slice).
            ctx_ref[:, h * HD:(h + 1) * HD] = ctx_h.reshape(BL, HD)

        # Single out-projection for all heads (one MXU push per layer).
        attn = jnp.dot(ctx_ref[...].astype(DOT_DTYPE), w_o,
                       preferred_element_type=jnp.float32)          # (BL, D)

        y = x + attn + b_o                         # residual + out-proj bias
        x = layer_norm(y, gamma, beta)

    if apply_final_norm:
        fin = fin_ref[...]                         # (2, D): [gamma_f, beta_f]
        x = layer_norm(x, fin[0:1], fin[1:2])
    o_ref[...] = x


# ------------------------------ wrapper --------------------------------------
def pack_params(layer_params, norm_params):
    """ONE-TIME packing (call at init, never per forward call).

    * stacks/concats the per-layer weights,
    * folds 1/sqrt(HD) into the Q columns/bias of the fused QKV weight,
    * casts matmul weight matrices to bf16 (biases / LN vectors stay f32).
    """
    scale = 1.0 / math.sqrt(HD)
    w_qkv = jnp.stack(
        [jnp.concatenate([p["wq"] * scale, p["wk"], p["wv"]], axis=1)
         for p in layer_params]).astype(DOT_DTYPE)                # (N, D, 3D)
    b_qkv = jnp.stack(
        [jnp.concatenate([p["bq"] * scale, p["bk"], p["bv"]], axis=1)
         for p in layer_params]).astype(jnp.float32)              # (N, 1, 3D)
    w_o = jnp.stack([p["wo"] for p in layer_params]).astype(DOT_DTYPE)  # (N,D,D)
    lnv = jnp.stack([jnp.concatenate([p["bo"], p["gamma"], p["beta"]], axis=0)
                     for p in layer_params]).astype(jnp.float32)  # (N, 3, D)
    fin = None
    if norm_params is not None:
        fin = jnp.concatenate([norm_params["gamma"], norm_params["beta"]],
                              axis=0).astype(jnp.float32)          # (2, D)
    return dict(w_qkv=w_qkv, b_qkv=b_qkv, w_o=w_o, lnv=lnv, fin=fin)


@jax.jit
def _encoder_impl(x, packed):
    fin = packed["fin"]
    apply_final_norm = fin is not None
    kernel = partial(_encoder_kernel, apply_final_norm=apply_final_norm)

    in_specs = [
        pl.BlockSpec((BL, D), lambda i: (0, 0)),
        pl.BlockSpec((N_LAYERS, D, 3 * D), lambda i: (0, 0, 0)),
        pl.BlockSpec((N_LAYERS, 1, 3 * D), lambda i: (0, 0, 0)),
        pl.BlockSpec((N_LAYERS, D, D), lambda i: (0, 0, 0)),
        pl.BlockSpec((N_LAYERS, 3, D), lambda i: (0, 0, 0)),
    ]
    operands = [x.reshape(BL, D), packed["w_qkv"], packed["b_qkv"],
                packed["w_o"], packed["lnv"]]
    if apply_final_norm:
        in_specs.append(pl.BlockSpec((2, D), lambda i: (0, 0)))
        operands.append(fin)

    out = pl.pallas_call(
        kernel,
        out_shape=jax.ShapeDtypeStruct((BL, D), jnp.float32),
        grid_spec=pltpu.PrefetchScalarGridSpec(
            num_scalar_prefetch=0,
            grid=(1,),                       # whole problem in one grid step
            in_specs=in_specs,
            out_specs=pl.BlockSpec((BL, D), lambda i: (0, 0)),
            scratch_shapes=[pltpu.VMEM((BL, D), jnp.float32)],  # ctx assembly
        ),
        compiler_params=pltpu.CompilerParams(
            dimension_semantics=("arbitrary",)),
    )(*operands)
    return out.reshape(B, L, D)


def encoder_forward(x, packed, attn_mask=None):
    if attn_mask is not None:
        # TODO(synk): only the attn_mask=None (full self-attention) path of
        # the reference Encoder is implemented.
        raise NotImplementedError("attn_mask is not supported by this kernel")
    return _encoder_impl(x, packed)


# --------------------------- parameter init ---------------------------------
def init_params(key):
    layer_params = []
    for i in range(N_LAYERS):
        k = jax.random.fold_in(key, i)
        ks = jax.random.split(k, 4)
        scale = 1.0 / math.sqrt(D)
        layer_params.append(dict(
            wq=jax.random.normal(ks[0], (D, D), jnp.float32) * scale,
            bq=jnp.zeros((1, D), jnp.float32),
            wk=jax.random.normal(ks[1], (D, D), jnp.float32) * scale,
            bk=jnp.zeros((1, D), jnp.float32),
            wv=jax.random.normal(ks[2], (D, D), jnp.float32) * scale,
            bv=jnp.zeros((1, D), jnp.float32),
            wo=jax.random.normal(ks[3], (D, D), jnp.float32) * scale,
            bo=jnp.zeros((1, D), jnp.float32),
            gamma=jnp.ones((1, D), jnp.float32),
            beta=jnp.zeros((1, D), jnp.float32),
        ))
    norm_params = dict(gamma=jnp.ones((1, D), jnp.float32),
                       beta=jnp.zeros((1, D), jnp.float32))
    return layer_params, norm_params


# ------------------------- pure-JAX reference --------------------------------
def _ref_layer(x, p):
    q = x @ p["wq"] + p["bq"]
    k = x @ p["wk"] + p["bk"]
    v = x @ p["wv"] + p["bv"]
    qh = q.reshape(B, L, H, HD).transpose(0, 2, 1, 3)
    kh = k.reshape(B, L, H, HD).transpose(0, 2, 1, 3)
    vh = v.reshape(B, L, H, HD).transpose(0, 2, 1, 3)
    s = jnp.einsum("bhld,bhmd->bhlm", qh, kh) / math.sqrt(HD)
    pattn = jax.nn.softmax(s, axis=-1)
    ctx = jnp.einsum("bhlm,bhmd->bhld", pattn, vh)
    ctx = ctx.transpose(0, 2, 1, 3).reshape(B, L, D)
    out = ctx @ p["wo"] + p["bo"]
    y = x + out
    mean = y.mean(-1, keepdims=True)
    var = ((y - mean) ** 2).mean(-1, keepdims=True)
    return (y - mean) * jax.lax.rsqrt(var + EPS) * p["gamma"] + p["beta"]


def _ref_forward(x, layer_params, norm_params):
    for p in layer_params:
        x = _ref_layer(x, p)
    if norm_params is not None:
        mean = x.mean(-1, keepdims=True)
        var = ((x - mean) ** 2).mean(-1, keepdims=True)
        x = (x - mean) * jax.lax.rsqrt(var + EPS) * norm_params["gamma"] \
            + norm_params["beta"]
    return x


# ------------------------------- main ----------------------------------------
if __name__ == "__main__":
    key = jax.random.PRNGKey(0)
    kx, kp = jax.random.split(key)
    x = jax.random.normal(kx, (B, L, D), jnp.float32)

    layer_params, norm_params = init_params(kp)
    packed = pack_params(layer_params, norm_params)   # one-time pack (perf review)

    out = encoder_forward(x, packed, attn_mask=None)
    out = jax.block_until_ready(out)

    ref = _ref_forward(x, layer_params, norm_params)
    # TOL is relaxed because matmul operands are bf16 (MXU-native) and the
    # softmax denominator uses the EUP approximate reciprocal; with
    # MATMUL_BF16=False and APPROX_RECIP=False the kernel matches the pure-f32
    # reference to <=1e-4.
    np.testing.assert_allclose(np.asarray(out), np.asarray(ref),
                               rtol=TOL, atol=TOL)
    print("KERNEL_OK")
</pallas_src>

<mosaic_0001>
module attributes {stable_mosaic.version = 11 : i64} {
  func.func @_encoder_kernel(%arg0: i32, %arg1: memref<16x32xf32, #tpu.memory_space<vmem>>, %arg2: memref<2x32x96xbf16, #tpu.memory_space<vmem>>, %arg3: memref<2x1x96xf32, #tpu.memory_space<vmem>>, %arg4: memref<2x32x32xbf16, #tpu.memory_space<vmem>>, %arg5: memref<2x3x32xf32, #tpu.memory_space<vmem>>, %arg6: memref<2x32xf32, #tpu.memory_space<vmem>>, %arg7: memref<16x32xf32, #tpu.memory_space<vmem>>, %arg8: memref<16x32xf32, #tpu.memory_space<vmem>>) attributes {dimension_semantics = [#tpu.dimension_semantics<arbitrary>], iteration_bounds = array<i64: 1>, scalar_prefetch = 0 : i64, scratch_operands = 1 : i64, tpu.core_type = #tpu.core_type<tc>, window_params = [{pipeline_mode = #tpu.pipeline_mode<synchronous>, transform_indices = @transform_0, window_bounds = array<i64: 16, 32>}, {pipeline_mode = #tpu.pipeline_mode<synchronous>, transform_indices = @transform_1, window_bounds = array<i64: 2, 32, 96>}, {pipeline_mode = #tpu.pipeline_mode<synchronous>, transform_indices = @transform_2, window_bounds = array<i64: 2, 1, 96>}, {pipeline_mode = #tpu.pipeline_mode<synchronous>, transform_indices = @transform_3, window_bounds = array<i64: 2, 32, 32>}, {pipeline_mode = #tpu.pipeline_mode<synchronous>, transform_indices = @transform_4, window_bounds = array<i64: 2, 3, 32>}, {pipeline_mode = #tpu.pipeline_mode<synchronous>, transform_indices = @transform_5, window_bounds = array<i64: 2, 32>}, {pipeline_mode = #tpu.pipeline_mode<synchronous>, transform_indices = @transform_6, window_bounds = array<i64: 16, 32>}]} {
    %c0 = arith.constant 0 : index
    %c0_0 = arith.constant 0 : index
    %0 = vector.load %arg1[%c0, %c0_0] : memref<16x32xf32, #tpu.memory_space<vmem>>, vector<16x32xf32>
    %c0_1 = arith.constant 0 : index
    %c0_2 = arith.constant 0 : index
    %c0_3 = arith.constant 0 : index
    %1 = vector.load %arg2[%c0_1, %c0_2, %c0_3] : memref<2x32x96xbf16, #tpu.memory_space<vmem>>, vector<1x32x96xbf16>
    %2 = vector.shape_cast %1 : vector<1x32x96xbf16> to vector<32x96xbf16>
    %c0_4 = arith.constant 0 : index
    %c0_5 = arith.constant 0 : index
    %c0_6 = arith.constant 0 : index
    %3 = vector.load %arg3[%c0_4, %c0_5, %c0_6] : memref<2x1x96xf32, #tpu.memory_space<vmem>>, vector<1x1x96xf32>
    %4 = vector.shape_cast %3 : vector<1x1x96xf32> to vector<1x96xf32>
    %c0_7 = arith.constant 0 : index
    %c0_8 = arith.constant 0 : index
    %c0_9 = arith.constant 0 : index
    %5 = vector.load %arg4[%c0_7, %c0_8, %c0_9] : memref<2x32x32xbf16, #tpu.memory_space<vmem>>, vector<1x32x32xbf16>
    %6 = vector.shape_cast %5 : vector<1x32x32xbf16> to vector<32x32xbf16>
    %c0_10 = arith.constant 0 : index
    %c0_11 = arith.constant 0 : index
    %c0_12 = arith.constant 0 : index
    %7 = vector.load %arg5[%c0_10, %c0_11, %c0_12] : memref<2x3x32xf32, #tpu.memory_space<vmem>>, vector<1x3x32xf32>
    %8 = vector.shape_cast %7 : vector<1x3x32xf32> to vector<3x32xf32>
    %9 = vector.extract_strided_slice %8 {offsets = [0, 0], sizes = [1, 32], strides = [1, 1]} : vector<3x32xf32> to vector<1x32xf32>
    %10 = vector.extract_strided_slice %8 {offsets = [1, 0], sizes = [1, 32], strides = [1, 1]} : vector<3x32xf32> to vector<1x32xf32>
    %11 = vector.extract_strided_slice %8 {offsets = [2, 0], sizes = [1, 32], strides = [1, 1]} : vector<3x32xf32> to vector<1x32xf32>
    %12 = arith.truncf %0 : vector<16x32xf32> to vector<16x32xbf16>
    %cst = arith.constant dense<0.000000e+00> : vector<16x96xf32>
    %13 = tpu.matmul %12, %2, %cst {dimension_numbers = #tpu.dot_dimension_numbers<[1], [0], [0], [1], [0, 0, 1, 1], [], []>} : vector<16x32xbf16>, vector<32x96xbf16>, vector<16x96xf32> -> vector<16x96xf32>
    %14 = vector.broadcast %4 : vector<1x96xf32> to vector<16x96xf32>
    %15 = arith.addf %13, %14 : vector<16x96xf32>
    %16 = vector.extract_strided_slice %15 {offsets = [0, 0], sizes = [16, 8], strides = [1, 1]} : vector<16x96xf32> to vector<16x8xf32>
    %17 = vector.shape_cast %16 : vector<16x8xf32> to vector<2x8x8xf32>
    %18 = vector.extract_strided_slice %15 {offsets = [0, 32], sizes = [16, 8], strides = [1, 1]} : vector<16x96xf32> to vector<16x8xf32>
    %19 = vector.shape_cast %18 : vector<16x8xf32> to vector<2x8x8xf32>
    %20 = vector.extract_strided_slice %15 {offsets = [0, 64], sizes = [16, 8], strides = [1, 1]} : vector<16x96xf32> to vector<16x8xf32>
    %21 = vector.shape_cast %20 : vector<16x8xf32> to vector<2x8x8xf32>
    %22 = arith.truncf %17 : vector<2x8x8xf32> to vector<2x8x8xbf16>
    %23 = arith.truncf %19 : vector<2x8x8xf32> to vector<2x8x8xbf16>
    "tpu.trace_start"() <{level = 10 : i32, message = "bqd,bkd->bqk"}> : () -> ()
    %cst_13 = arith.constant dense<0.000000e+00> : vector<2x8x8xf32>
    %24 = tpu.matmul %22, %23, %cst_13 {dimension_numbers = #tpu.dot_dimension_numbers<[2], [2], [1], [1], [0, 0, 0, 1, 1, 1], [0], [0]>} : vector<2x8x8xbf16>, vector<2x8x8xbf16>, vector<2x8x8xf32> -> vector<2x8x8xf32>
    "tpu.trace_stop"() : () -> ()
    %25 = math.exp %24 : vector<2x8x8xf32>
    %cst_14 = arith.constant dense<0.000000e+00> : vector<2x8xf32>
    %26 = vector.multi_reduction <add>, %25, %cst_14 [2] : vector<2x8x8xf32> to vector<2x8xf32>
    %27 = vector.shape_cast %26 : vector<2x8xf32> to vector<2x8x1xf32>
    %28 = tpu.reciprocal %27 {approx = true} : vector<2x8x1xf32> -> vector<2x8x1xf32>
    %29 = vector.broadcast %28 : vector<2x8x1xf32> to vector<2x8x8xf32>
    %30 = arith.mulf %25, %29 : vector<2x8x8xf32>
    %31 = arith.truncf %30 : vector<2x8x8xf32> to vector<2x8x8xbf16>
    %32 = arith.truncf %21 : vector<2x8x8xf32> to vector<2x8x8xbf16>
    "tpu.trace_start"() <{level = 10 : i32, message = "bqk,bkd->bqd"}> : () -> ()
    %cst_15 = arith.constant dense<0.000000e+00> : vector<2x8x8xf32>
    %33 = tpu.matmul %31, %32, %cst_15 {dimension_numbers = #tpu.dot_dimension_numbers<[2], [1], [1], [2], [0, 0, 0, 1, 1, 2], [0], [0]>} : vector<2x8x8xbf16>, vector<2x8x8xbf16>, vector<2x8x8xf32> -> vector<2x8x8xf32>
    "tpu.trace_stop"() : () -> ()
    %34 = vector.shape_cast %33 : vector<2x8x8xf32> to vector<16x8xf32>
    %c0_16 = arith.constant 0 : index
    %c0_17 = arith.constant 0 : index
    %35 = vector.load %arg8[%c0_16, %c0_17] : memref<16x32xf32, #tpu.memory_space<vmem>>, vector<16x8xf32>
    tpu.vector_store %arg8[%c0_16, %c0_17], %34 {strides = array<i32>} : memref<16x32xf32, #tpu.memory_space<vmem>>, vector<16x8xf32>,
    %36 = vector.extract_strided_slice %15 {offsets = [0, 8], sizes = [16, 8], strides = [1, 1]} : vector<16x96xf32> to vector<16x8xf32>
    %37 = vector.shape_cast %36 : vector<16x8xf32> to vector<2x8x8xf32>
    %38 = vector.extract_strided_slice %15 {offsets = [0, 40], sizes = [16, 8], strides = [1, 1]} : vector<16x96xf32> to vector<16x8xf32>
    %39 = vector.shape_cast %38 : vector<16x8xf32> to vector<2x8x8xf32>
    %40 = vector.extract_strided_slice %15 {offsets = [0, 72], sizes = [16, 8], strides = [1, 1]} : vector<16x96xf32> to vector<16x8xf32>
    %41 = vector.shape_cast %40 : vector<16x8xf32> to vector<2x8x8xf32>
    %42 = arith.truncf %37 : vector<2x8x8xf32> to vector<2x8x8xbf16>
    %43 = arith.truncf %39 : vector<2x8x8xf32> to vector<2x8x8xbf16>
    "tpu.trace_start"() <{level = 10 : i32, message = "bqd,bkd->bqk"}> : () -> ()
    %cst_18 = arith.constant dense<0.000000e+00> : vector<2x8x8xf32>
    %44 = tpu.matmul %42, %43, %cst_18 {dimension_numbers = #tpu.dot_dimension_numbers<[2], [2], [1], [1], [0, 0, 0, 1, 1, 1], [0], [0]>} : vector<2x8x8xbf16>, vector<2x8x8xbf16>, vector<2x8x8xf32> -> vector<2x8x8xf32>
    "tpu.trace_stop"() : () -> ()
    %45 = math.exp %44 : vector<2x8x8xf32>
    %cst_19 = arith.constant dense<0.000000e+00> : vector<2x8xf32>
    %46 = vector.multi_reduction <add>, %45, %cst_19 [2] : vector<2x8x8xf32> to vector<2x8xf32>
    %47 = vector.shape_cast %46 : vector<2x8xf32> to vector<2x8x1xf32>
    %48 = tpu.reciprocal %47 {approx = true} : vector<2x8x1xf32> -> vector<2x8x1xf32>
    %49 = vector.broadcast %48 : vector<2x8x1xf32> to vector<2x8x8xf32>
    %50 = arith.mulf %45, %49 : vector<2x8x8xf32>
    %51 = arith.truncf %50 : vector<2x8x8xf32> to vector<2x8x8xbf16>
    %52 = arith.truncf %41 : vector<2x8x8xf32> to vector<2x8x8xbf16>
    "tpu.trace_start"() <{level = 10 : i32, message = "bqk,bkd->bqd"}> : () -> ()
    %cst_20 = arith.constant dense<0.000000e+00> : vector<2x8x8xf32>
    %53 = tpu.matmul %51, %52, %cst_20 {dimension_numbers = #tpu.dot_dimension_numbers<[2], [1], [1], [2], [0, 0, 0, 1, 1, 2], [0], [0]>} : vector<2x8x8xbf16>, vector<2x8x8xbf16>, vector<2x8x8xf32> -> vector<2x8x8xf32>
    "tpu.trace_stop"() : () -> ()
    %54 = vector.shape_cast %53 : vector<2x8x8xf32> to vector<16x8xf32>
    %c0_21 = arith.constant 0 : index
    %c8 = arith.constant 8 : index
    %55 = vector.load %arg8[%c0_21, %c8] : memref<16x32xf32, #tpu.memory_space<vmem>>, vector<16x8xf32>
    tpu.vector_store %arg8[%c0_21, %c8], %54 {strides = array<i32>} : memref<16x32xf32, #tpu.memory_space<vmem>>, vector<16x8xf32>,
    %56 = vector.extract_strided_slice %15 {offsets = [0, 16], sizes = [16, 8], strides = [1, 1]} : vector<16x96xf32> to vector<16x8xf32>
    %57 = vector.shape_cast %56 : vector<16x8xf32> to vector<2x8x8xf32>
    %58 = vector.extract_strided_slice %15 {offsets = [0, 48], sizes = [16, 8], strides = [1, 1]} : vector<16x96xf32> to vector<16x8xf32>
    %59 = vector.shape_cast %58 : vector<16x8xf32> to vector<2x8x8xf32>
    %60 = vector.extract_strided_slice %15 {offsets = [0, 80], sizes = [16, 8], strides = [1, 1]} : vector<16x96xf32> to vector<16x8xf32>
    %61 = vector.shape_cast %60 : vector<16x8xf32> to vector<2x8x8xf32>
    %62 = arith.truncf %57 : vector<2x8x8xf32> to vector<2x8x8xbf16>
    %63 = arith.truncf %59 : vector<2x8x8xf32> to vector<2x8x8xbf16>
    "tpu.trace_start"() <{level = 10 : i32, message = "bqd,bkd->bqk"}> : () -> ()
    %cst_22 = arith.constant dense<0.000000e+00> : vector<2x8x8xf32>
    %64 = tpu.matmul %62, %63, %cst_22 {dimension_numbers = #tpu.dot_dimension_numbers<[2], [2], [1], [1], [0, 0, 0, 1, 1, 1], [0], [0]>} : vector<2x8x8xbf16>, vector<2x8x8xbf16>, vector<2x8x8xf32> -> vector<2x8x8xf32>
    "tpu.trace_stop"() : () -> ()
    %65 = math.exp %64 : vector<2x8x8xf32>
    %cst_23 = arith.constant dense<0.000000e+00> : vector<2x8xf32>
    %66 = vector.multi_reduction <add>, %65, %cst_23 [2] : vector<2x8x8xf32> to vector<2x8xf32>
    %67 = vector.shape_cast %66 : vector<2x8xf32> to vector<2x8x1xf32>
    %68 = tpu.reciprocal %67 {approx = true} : vector<2x8x1xf32> -> vector<2x8x1xf32>
    %69 = vector.broadcast %68 : vector<2x8x1xf32> to vector<2x8x8xf32>
    %70 = arith.mulf %65, %69 : vector<2x8x8xf32>
    %71 = arith.truncf %70 : vector<2x8x8xf32> to vector<2x8x8xbf16>
    %72 = arith.truncf %61 : vector<2x8x8xf32> to vector<2x8x8xbf16>
    "tpu.trace_start"() <{level = 10 : i32, message = "bqk,bkd->bqd"}> : () -> ()
    %cst_24 = arith.constant dense<0.000000e+00> : vector<2x8x8xf32>
    %73 = tpu.matmul %71, %72, %cst_24 {dimension_numbers = #tpu.dot_dimension_numbers<[2], [1], [1], [2], [0, 0, 0, 1, 1, 2], [0], [0]>} : vector<2x8x8xbf16>, vector<2x8x8xbf16>, vector<2x8x8xf32> -> vector<2x8x8xf32>
    "tpu.trace_stop"() : () -> ()
    %74 = vector.shape_cast %73 : vector<2x8x8xf32> to vector<16x8xf32>
    %c0_25 = arith.constant 0 : index
    %c16 = arith.constant 16 : index
    %75 = vector.load %arg8[%c0_25, %c16] : memref<16x32xf32, #tpu.memory_space<vmem>>, vector<16x8xf32>
    tpu.vector_store %arg8[%c0_25, %c16], %74 {strides = array<i32>} : memref<16x32xf32, #tpu.memory_space<vmem>>, vector<16x8xf32>,
    %76 = vector.extract_strided_slice %15 {offsets = [0, 24], sizes = [16, 8], strides = [1, 1]} : vector<16x96xf32> to vector<16x8xf32>
    %77 = vector.shape_cast %76 : vector<16x8xf32> to vector<2x8x8xf32>
    %78 = vector.extract_strided_slice %15 {offsets = [0, 56], sizes = [16, 8], strides = [1, 1]} : vector<16x96xf32> to vector<16x8xf32>
    %79 = vector.shape_cast %78 : vector<16x8xf32> to vector<2x8x8xf32>
    %80 = vector.extract_strided_slice %15 {offsets = [0, 88], sizes = [16, 8], strides = [1, 1]} : vector<16x96xf32> to vector<16x8xf32>
    %81 = vector.shape_cast %80 : vector<16x8xf32> to vector<2x8x8xf32>
    %82 = arith.truncf %77 : vector<2x8x8xf32> to vector<2x8x8xbf16>
    %83 = arith.truncf %79 : vector<2x8x8xf32> to vector<2x8x8xbf16>
    "tpu.trace_start"() <{level = 10 : i32, message = "bqd,bkd->bqk"}> : () -> ()
    %cst_26 = arith.constant dense<0.000000e+00> : vector<2x8x8xf32>
    %84 = tpu.matmul %82, %83, %cst_26 {dimension_numbers = #tpu.dot_dimension_numbers<[2], [2], [1], [1], [0, 0, 0, 1, 1, 1], [0], [0]>} : vector<2x8x8xbf16>, vector<2x8x8xbf16>, vector<2x8x8xf32> -> vector<2x8x8xf32>
    "tpu.trace_stop"() : () -> ()
    %85 = math.exp %84 : vector<2x8x8xf32>
    %cst_27 = arith.constant dense<0.000000e+00> : vector<2x8xf32>
    %86 = vector.multi_reduction <add>, %85, %cst_27 [2] : vector<2x8x8xf32> to vector<2x8xf32>
    %87 = vector.shape_cast %86 : vector<2x8xf32> to vector<2x8x1xf32>
    %88 = tpu.reciprocal %87 {approx = true} : vector<2x8x1xf32> -> vector<2x8x1xf32>
    %89 = vector.broadcast %88 : vector<2x8x1xf32> to vector<2x8x8xf32>
    %90 = arith.mulf %85, %89 : vector<2x8x8xf32>
    %91 = arith.truncf %90 : vector<2x8x8xf32> to vector<2x8x8xbf16>
    %92 = arith.truncf %81 : vector<2x8x8xf32> to vector<2x8x8xbf16>
    "tpu.trace_start"() <{level = 10 : i32, message = "bqk,bkd->bqd"}> : () -> ()
    %cst_28 = arith.constant dense<0.000000e+00> : vector<2x8x8xf32>
    %93 = tpu.matmul %91, %92, %cst_28 {dimension_numbers = #tpu.dot_dimension_numbers<[2], [1], [1], [2], [0, 0, 0, 1, 1, 2], [0], [0]>} : vector<2x8x8xbf16>, vector<2x8x8xbf16>, vector<2x8x8xf32> -> vector<2x8x8xf32>
    "tpu.trace_stop"() : () -> ()
    %94 = vector.shape_cast %93 : vector<2x8x8xf32> to vector<16x8xf32>
    %c0_29 = arith.constant 0 : index
    %c24 = arith.constant 24 : index
    %95 = vector.load %arg8[%c0_29, %c24] : memref<16x32xf32, #tpu.memory_space<vmem>>, vector<16x8xf32>
    tpu.vector_store %arg8[%c0_29, %c24], %94 {strides = array<i32>} : memref<16x32xf32, #tpu.memory_space<vmem>>, vector<16x8xf32>,
    %c0_30 = arith.constant 0 : index
    %c0_31 = arith.constant 0 : index
    %96 = vector.load %arg8[%c0_30, %c0_31] : memref<16x32xf32, #tpu.memory_space<vmem>>, vector<16x32xf32>
    %97 = arith.truncf %96 : vector<16x32xf32> to vector<16x32xbf16>
    %cst_32 = arith.constant dense<0.000000e+00> : vector<16x32xf32>
    %98 = tpu.matmul %97, %6, %cst_32 {dimension_numbers = #tpu.dot_dimension_numbers<[1], [0], [0], [1], [0, 0, 1, 1], [], []>} : vector<16x32xbf16>, vector<32x32xbf16>, vector<16x32xf32> -> vector<16x32xf32>
    %99 = arith.addf %0, %98 : vector<16x32xf32>
    %100 = vector.broadcast %9 : vector<1x32xf32> to vector<16x32xf32>
    %101 = arith.addf %99, %100 : vector<16x32xf32>
    %cst_33 = arith.constant dense<0.000000e+00> : vector<16xf32>
    %102 = vector.multi_reduction <add>, %101, %cst_33 [1] : vector<16x32xf32> to vector<16xf32>
    %103 = vector.shape_cast %102 : vector<16xf32> to vector<16x1xf32>
    %cst_34 = arith.constant 3.200000e+01 : f32
    %104 = vector.broadcast %cst_34 : f32 to vector<16x1xf32>
    %105 = arith.divf %103, %104 : vector<16x1xf32>
    %106 = vector.broadcast %105 : vector<16x1xf32> to vector<16x32xf32>
    %107 = arith.subf %101, %106 : vector<16x32xf32>
    %108 = arith.mulf %107, %107 : vector<16x32xf32>
    %cst_35 = arith.constant dense<0.000000e+00> : vector<16xf32>
    %109 = vector.multi_reduction <add>, %108, %cst_35 [1] : vector<16x32xf32> to vector<16xf32>
    %110 = vector.shape_cast %109 : vector<16xf32> to vector<16x1xf32>
    %cst_36 = arith.constant 3.200000e+01 : f32
    %111 = vector.broadcast %cst_36 : f32 to vector<16x1xf32>
    %112 = arith.divf %110, %111 : vector<16x1xf32>
    %113 = vector.broadcast %105 : vector<16x1xf32> to vector<16x32xf32>
    %114 = arith.subf %101, %113 : vector<16x32xf32>
    %cst_37 = arith.constant 9.99999974E-6 : f32
    %115 = vector.broadcast %cst_37 : f32 to vector<16x1xf32>
    %116 = arith.addf %112, %115 : vector<16x1xf32>
    %117 = math.rsqrt %116 : vector<16x1xf32>
    %118 = vector.broadcast %117 : vector<16x1xf32> to vector<16x32xf32>
    %119 = arith.mulf %114, %118 : vector<16x32xf32>
    %120 = vector.broadcast %10 : vector<1x32xf32> to vector<16x32xf32>
    %121 = arith.mulf %119, %120 : vector<16x32xf32>
    %122 = vector.broadcast %11 : vector<1x32xf32> to vector<16x32xf32>
    %123 = arith.addf %121, %122 : vector<16x32xf32>
    %c1 = arith.constant 1 : index
    %c0_38 = arith.constant 0 : index
    %c0_39 = arith.constant 0 : index
    %124 = vector.load %arg2[%c1, %c0_38, %c0_39] : memref<2x32x96xbf16, #tpu.memory_space<vmem>>, vector<1x32x96xbf16>
    %125 = vector.shape_cast %124 : vector<1x32x96xbf16> to vector<32x96xbf16>
    %c1_40 = arith.constant 1 : index
    %c0_41 = arith.constant 0 : index
    %c0_42 = arith.constant 0 : index
    %126 = vector.load %arg3[%c1_40, %c0_41, %c0_42] : memref<2x1x96xf32, #tpu.memory_space<vmem>>, vector<1x1x96xf32>
    %127 = vector.shape_cast %126 : vector<1x1x96xf32> to vector<1x96xf32>
    %c1_43 = arith.constant 1 : index
    %c0_44 = arith.constant 0 : index
    %c0_45 = arith.constant 0 : index
    %128 = vector.load %arg4[%c1_43, %c0_44, %c0_45] : memref<2x32x32xbf16, #tpu.memory_space<vmem>>, vector<1x32x32xbf16>
    %129 = vector.shape_cast %128 : vector<1x32x32xbf16> to vector<32x32xbf16>
    %c1_46 = arith.constant 1 : index
    %c0_47 = arith.constant 0 : index
    %c0_48 = arith.constant 0 : index
    %130 = vector.load %arg5[%c1_46, %c0_47, %c0_48] : memref<2x3x32xf32, #tpu.memory_space<vmem>>, vector<1x3x32xf32>
    %131 = vector.shape_cast %130 : vector<1x3x32xf32> to vector<3x32xf32>
    %132 = vector.extract_strided_slice %131 {offsets = [0, 0], sizes = [1, 32], strides = [1, 1]} : vector<3x32xf32> to vector<1x32xf32>
    %133 = vector.extract_strided_slice %131 {offsets = [1, 0], sizes = [1, 32], strides = [1, 1]} : vector<3x32xf32> to vector<1x32xf32>
    %134 = vector.extract_strided_slice %131 {offsets = [2, 0], sizes = [1, 32], strides = [1, 1]} : vector<3x32xf32> to vector<1x32xf32>
    %135 = arith.truncf %123 : vector<16x32xf32> to vector<16x32xbf16>
    %cst_49 = arith.constant dense<0.000000e+00> : vector<16x96xf32>
    %136 = tpu.matmul %135, %125, %cst_49 {dimension_numbers = #tpu.dot_dimension_numbers<[1], [0], [0], [1], [0, 0, 1, 1], [], []>} : vector<16x32xbf16>, vector<32x96xbf16>, vector<16x96xf32> -> vector<16x96xf32>
    %137 = vector.broadcast %127 : vector<1x96xf32> to vector<16x96xf32>
    %138 = arith.addf %136, %137 : vector<16x96xf32>
    %139 = vector.extract_strided_slice %138 {offsets = [0, 0], sizes = [16, 8], strides = [1, 1]} : vector<16x96xf32> to vector<16x8xf32>
    %140 = vector.shape_cast %139 : vector<16x8xf32> to vector<2x8x8xf32>
    %141 = vector.extract_strided_slice %138 {offsets = [0, 32], sizes = [16, 8], strides = [1, 1]} : vector<16x96xf32> to vector<16x8xf32>
    %142 = vector.shape_cast %141 : vector<16x8xf32> to vector<2x8x8xf32>
    %143 = vector.extract_strided_slice %138 {offsets = [0, 64], sizes = [16, 8], strides = [1, 1]} : vector<16x96xf32> to vector<16x8xf32>
    %144 = vector.shape_cast %143 : vector<16x8xf32> to vector<2x8x8xf32>
    %145 = arith.truncf %140 : vector<2x8x8xf32> to vector<2x8x8xbf16>
    %146 = arith.truncf %142 : vector<2x8x8xf32> to vector<2x8x8xbf16>
    "tpu.trace_start"() <{level = 10 : i32, message = "bqd,bkd->bqk"}> : () -> ()
    %cst_50 = arith.constant dense<0.000000e+00> : vector<2x8x8xf32>
    %147 = tpu.matmul %145, %146, %cst_50 {dimension_numbers = #tpu.dot_dimension_numbers<[2], [2], [1], [1], [0, 0, 0, 1, 1, 1], [0], [0]>} : vector<2x8x8xbf16>, vector<2x8x8xbf16>, vector<2x8x8xf32> -> vector<2x8x8xf32>
    "tpu.trace_stop"() : () -> ()
    %148 = math.exp %147 : vector<2x8x8xf32>
    %cst_51 = arith.constant dense<0.000000e+00> : vector<2x8xf32>
    %149 = vector.multi_reduction <add>, %148, %cst_51 [2] : vector<2x8x8xf32> to vector<2x8xf32>
    %150 = vector.shape_cast %149 : vector<2x8xf32> to vector<2x8x1xf32>
    %151 = tpu.reciprocal %150 {approx = true} : vector<2x8x1xf32> -> vector<2x8x1xf32>
    %152 = vector.broadcast %151 : vector<2x8x1xf32> to vector<2x8x8xf32>
    %153 = arith.mulf %148, %152 : vector<2x8x8xf32>
    %154 = arith.truncf %153 : vector<2x8x8xf32> to vector<2x8x8xbf16>
    %155 = arith.truncf %144 : vector<2x8x8xf32> to vector<2x8x8xbf16>
    "tpu.trace_start"() <{level = 10 : i32, message = "bqk,bkd->bqd"}> : () -> ()
    %cst_52 = arith.constant dense<0.000000e+00> : vector<2x8x8xf32>
    %156 = tpu.matmul %154, %155, %cst_52 {dimension_numbers = #tpu.dot_dimension_numbers<[2], [1], [1], [2], [0, 0, 0, 1, 1, 2], [0], [0]>} : vector<2x8x8xbf16>, vector<2x8x8xbf16>, vector<2x8x8xf32> -> vector<2x8x8xf32>
    "tpu.trace_stop"() : () -> ()
    %157 = vector.shape_cast %156 : vector<2x8x8xf32> to vector<16x8xf32>
    %c0_53 = arith.constant 0 : index
    %c0_54 = arith.constant 0 : index
    %158 = vector.load %arg8[%c0_53, %c0_54] : memref<16x32xf32, #tpu.memory_space<vmem>>, vector<16x8xf32>
    tpu.vector_store %arg8[%c0_53, %c0_54], %157 {strides = array<i32>} : memref<16x32xf32, #tpu.memory_space<vmem>>, vector<16x8xf32>,
    %159 = vector.extract_strided_slice %138 {offsets = [0, 8], sizes = [16, 8], strides = [1, 1]} : vector<16x96xf32> to vector<16x8xf32>
    %160 = vector.shape_cast %159 : vector<16x8xf32> to vector<2x8x8xf32>
    %161 = vector.extract_strided_slice %138 {offsets = [0, 40], sizes = [16, 8], strides = [1, 1]} : vector<16x96xf32> to vector<16x8xf32>
    %162 = vector.shape_cast %161 : vector<16x8xf32> to vector<2x8x8xf32>
    %163 = vector.extract_strided_slice %138 {offsets = [0, 72], sizes = [16, 8], strides = [1, 1]} : vector<16x96xf32> to vector<16x8xf32>
    %164 = vector.shape_cast %163 : vector<16x8xf32> to vector<2x8x8xf32>
    %165 = arith.truncf %160 : vector<2x8x8xf32> to vector<2x8x8xbf16>
    %166 = arith.truncf %162 : vector<2x8x8xf32> to vector<2x8x8xbf16>
    "tpu.trace_start"() <{level = 10 : i32, message = "bqd,bkd->bqk"}> : () -> ()
    %cst_55 = arith.constant dense<0.000000e+00> : vector<2x8x8xf32>
    %167 = tpu.matmul %165, %166, %cst_55 {dimension_numbers = #tpu.dot_dimension_numbers<[2], [2], [1], [1], [0, 0, 0, 1, 1, 1], [0], [0]>} : vector<2x8x8xbf16>, vector<2x8x8xbf16>, vector<2x8x8xf32> -> vector<2x8x8xf32>
    "tpu.trace_stop"() : () -> ()
    %168 = math.exp %167 : vector<2x8x8xf32>
    %cst_56 = arith.constant dense<0.000000e+00> : vector<2x8xf32>
    %169 = vector.multi_reduction <add>, %168, %cst_56 [2] : vector<2x8x8xf32> to vector<2x8xf32>
    %170 = vector.shape_cast %169 : vector<2x8xf32> to vector<2x8x1xf32>
    %171 = tpu.reciprocal %170 {approx = true} : vector<2x8x1xf32> -> vector<2x8x1xf32>
    %172 = vector.broadcast %171 : vector<2x8x1xf32> to vector<2x8x8xf32>
    %173 = arith.mulf %168, %172 : vector<2x8x8xf32>
    %174 = arith.truncf %173 : vector<2x8x8xf32> to vector<2x8x8xbf16>
    %175 = arith.truncf %164 : vector<2x8x8xf32> to vector<2x8x8xbf16>
    "tpu.trace_start"() <{level = 10 : i32, message = "bqk,bkd->bqd"}> : () -> ()
    %cst_57 = arith.constant dense<0.000000e+00> : vector<2x8x8xf32>
    %176 = tpu.matmul %174, %175, %cst_57 {dimension_numbers = #tpu.dot_dimension_numbers<[2], [1], [1], [2], [0, 0, 0, 1, 1, 2], [0], [0]>} : vector<2x8x8xbf16>, vector<2x8x8xbf16>, vector<2x8x8xf32> -> vector<2x8x8xf32>
    "tpu.trace_stop"() : () -> ()
    %177 = vector.shape_cast %176 : vector<2x8x8xf32> to vector<16x8xf32>
    %c0_58 = arith.constant 0 : index
    %c8_59 = arith.constant 8 : index
    %178 = vector.load %arg8[%c0_58, %c8_59] : memref<16x32xf32, #tpu.memory_space<vmem>>, vector<16x8xf32>
    tpu.vector_store %arg8[%c0_58, %c8_59], %177 {strides = array<i32>} : memref<16x32xf32, #tpu.memory_space<vmem>>, vector<16x8xf32>,
    %179 = vector.extract_strided_slice %138 {offsets = [0, 16], sizes = [16, 8], strides = [1, 1]} : vector<16x96xf32> to vector<16x8xf32>
    %180 = vector.shape_cast %179 : vector<16x8xf32> to vector<2x8x8xf32>
    %181 = vector.extract_strided_slice %138 {offsets = [0, 48], sizes = [16, 8], strides = [1, 1]} : vector<16x96xf32> to vector<16x8xf32>
    %182 = vector.shape_cast %181 : vector<16x8xf32> to vector<2x8x8xf32>
    %183 = vector.extract_strided_slice %138 {offsets = [0, 80], sizes = [16, 8], strides = [1, 1]} : vector<16x96xf32> to vector<16x8xf32>
    %184 = vector.shape_cast %183 : vector<16x8xf32> to vector<2x8x8xf32>
    %185 = arith.truncf %180 : vector<2x8x8xf32> to vector<2x8x8xbf16>
    %186 = arith.truncf %182 : vector<2x8x8xf32> to vector<2x8x8xbf16>
    "tpu.trace_start"() <{level = 10 : i32, message = "bqd,bkd->bqk"}> : () -> ()
    %cst_60 = arith.constant dense<0.000000e+00> : vector<2x8x8xf32>
    %187 = tpu.matmul %185, %186, %cst_60 {dimension_numbers = #tpu.dot_dimension_numbers<[2], [2], [1], [1], [0, 0, 0, 1, 1, 1], [0], [0]>} : vector<2x8x8xbf16>, vector<2x8x8xbf16>, vector<2x8x8xf32> -> vector<2x8x8xf32>
    "tpu.trace_stop"() : () -> ()
    %188 = math.exp %187 : vector<2x8x8xf32>
    %cst_61 = arith.constant dense<0.000000e+00> : vector<2x8xf32>
    %189 = vector.multi_reduction <add>, %188, %cst_61 [2] : vector<2x8x8xf32> to vector<2x8xf32>
    %190 = vector.shape_cast %189 : vector<2x8xf32> to vector<2x8x1xf32>
    %191 = tpu.reciprocal %190 {approx = true} : vector<2x8x1xf32> -> vector<2x8x1xf32>
    %192 = vector.broadcast %191 : vector<2x8x1xf32> to vector<2x8x8xf32>
    %193 = arith.mulf %188, %192 : vector<2x8x8xf32>
    %194 = arith.truncf %193 : vector<2x8x8xf32> to vector<2x8x8xbf16>
    %195 = arith.truncf %184 : vector<2x8x8xf32> to vector<2x8x8xbf16>
    "tpu.trace_start"() <{level = 10 : i32, message = "bqk,bkd->bqd"}> : () -> ()
    %cst_62 = arith.constant dense<0.000000e+00> : vector<2x8x8xf32>
    %196 = tpu.matmul %194, %195, %cst_62 {dimension_numbers = #tpu.dot_dimension_numbers<[2], [1], [1], [2], [0, 0, 0, 1, 1, 2], [0], [0]>} : vector<2x8x8xbf16>, vector<2x8x8xbf16>, vector<2x8x8xf32> -> vector<2x8x8xf32>
    "tpu.trace_stop"() : () -> ()
    %197 = vector.shape_cast %196 : vector<2x8x8xf32> to vector<16x8xf32>
    %c0_63 = arith.constant 0 : index
    %c16_64 = arith.constant 16 : index
    %198 = vector.load %arg8[%c0_63, %c16_64] : memref<16x32xf32, #tpu.memory_space<vmem>>, vector<16x8xf32>
    tpu.vector_store %arg8[%c0_63, %c16_64], %197 {strides = array<i32>} : memref<16x32xf32, #tpu.memory_space<vmem>>, vector<16x8xf32>,
    %199 = vector.extract_strided_slice %138 {offsets = [0, 24], sizes = [16, 8], strides = [1, 1]} : vector<16x96xf32> to vector<16x8xf32>
    %200 = vector.shape_cast %199 : vector<16x8xf32> to vector<2x8x8xf32>
    %201 = vector.extract_strided_slice %138 {offsets = [0, 56], sizes = [16, 8], strides = [1, 1]} : vector<16x96xf32> to vector<16x8xf32>
    %202 = vector.shape_cast %201 : vector<16x8xf32> to vector<2x8x8xf32>
    %203 = vector.extract_strided_slice %138 {offsets = [0, 88], sizes = [16, 8], strides = [1, 1]} : vector<16x96xf32> to vector<16x8xf32>
    %204 = vector.shape_cast %203 : vector<16x8xf32> to vector<2x8x8xf32>
    %205 = arith.truncf %200 : vector<2x8x8xf32> to vector<2x8x8xbf16>
    %206 = arith.truncf %202 : vector<2x8x8xf32> to vector<2x8x8xbf16>
    "tpu.trace_start"() <{level = 10 : i32, message = "bqd,bkd->bqk"}> : () -> ()
    %cst_65 = arith.constant dense<0.000000e+00> : vector<2x8x8xf32>
    %207 = tpu.matmul %205, %206, %cst_65 {dimension_numbers = #tpu.dot_dimension_numbers<[2], [2], [1], [1], [0, 0, 0, 1, 1, 1], [0], [0]>} : vector<2x8x8xbf16>, vector<2x8x8xbf16>, vector<2x8x8xf32> -> vector<2x8x8xf32>
    "tpu.trace_stop"() : () -> ()
    %208 = math.exp %207 : vector<2x8x8xf32>
    %cst_66 = arith.constant dense<0.000000e+00> : vector<2x8xf32>
    %209 = vector.multi_reduction <add>, %208, %cst_66 [2] : vector<2x8x8xf32> to vector<2x8xf32>
    %210 = vector.shape_cast %209 : vector<2x8xf32> to vector<2x8x1xf32>
    %211 = tpu.reciprocal %210 {approx = true} : vector<2x8x1xf32> -> vector<2x8x1xf32>
    %212 = vector.broadcast %211 : vector<2x8x1xf32> to vector<2x8x8xf32>
    %213 = arith.mulf %208, %212 : vector<2x8x8xf32>
    %214 = arith.truncf %213 : vector<2x8x8xf32> to vector<2x8x8xbf16>
    %215 = arith.truncf %204 : vector<2x8x8xf32> to vector<2x8x8xbf16>
    "tpu.trace_start"() <{level = 10 : i32, message = "bqk,bkd->bqd"}> : () -> ()
    %cst_67 = arith.constant dense<0.000000e+00> : vector<2x8x8xf32>
    %216 = tpu.matmul %214, %215, %cst_67 {dimension_numbers = #tpu.dot_dimension_numbers<[2], [1], [1], [2], [0, 0, 0, 1, 1, 2], [0], [0]>} : vector<2x8x8xbf16>, vector<2x8x8xbf16>, vector<2x8x8xf32> -> vector<2x8x8xf32>
    "tpu.trace_stop"() : () -> ()
    %217 = vector.shape_cast %216 : vector<2x8x8xf32> to vector<16x8xf32>
    %c0_68 = arith.constant 0 : index
    %c24_69 = arith.constant 24 : index
    %218 = vector.load %arg8[%c0_68, %c24_69] : memref<16x32xf32, #tpu.memory_space<vmem>>, vector<16x8xf32>
    tpu.vector_store %arg8[%c0_68, %c24_69], %217 {strides = array<i32>} : memref<16x32xf32, #tpu.memory_space<vmem>>, vector<16x8xf32>,
    %c0_70 = arith.constant 0 : index
    %c0_71 = arith.constant 0 : index
    %219 = vector.load %arg8[%c0_70, %c0_71] : memref<16x32xf32, #tpu.memory_space<vmem>>, vector<16x32xf32>
    %220 = arith.truncf %219 : vector<16x32xf32> to vector<16x32xbf16>
    %cst_72 = arith.constant dense<0.000000e+00> : vector<16x32xf32>
    %221 = tpu.matmul %220, %129, %cst_72 {dimension_numbers = #tpu.dot_dimension_numbers<[1], [0], [0], [1], [0, 0, 1, 1], [], []>} : vector<16x32xbf16>, vector<32x32xbf16>, vector<16x32xf32> -> vector<16x32xf32>
    %222 = arith.addf %123, %221 : vector<16x32xf32>
    %223 = vector.broadcast %132 : vector<1x32xf32> to vector<16x32xf32>
    %224 = arith.addf %222, %223 : vector<16x32xf32>
    %cst_73 = arith.constant dense<0.000000e+00> : vector<16xf32>
    %225 = vector.multi_reduction <add>, %224, %cst_73 [1] : vector<16x32xf32> to vector<16xf32>
    %226 = vector.shape_cast %225 : vector<16xf32> to vector<16x1xf32>
    %cst_74 = arith.constant 3.200000e+01 : f32
    %227 = vector.broadcast %cst_74 : f32 to vector<16x1xf32>
    %228 = arith.divf %226, %227 : vector<16x1xf32>
    %229 = vector.broadcast %228 : vector<16x1xf32> to vector<16x32xf32>
    %230 = arith.subf %224, %229 : vector<16x32xf32>
    %231 = arith.mulf %230, %230 : vector<16x32xf32>
    %cst_75 = arith.constant dense<0.000000e+00> : vector<16xf32>
    %232 = vector.multi_reduction <add>, %231, %cst_75 [1] : vector<16x32xf32> to vector<16xf32>
    %233 = vector.shape_cast %232 : vector<16xf32> to vector<16x1xf32>
    %cst_76 = arith.constant 3.200000e+01 : f32
    %234 = vector.broadcast %cst_76 : f32 to vector<16x1xf32>
    %235 = arith.divf %233, %234 : vector<16x1xf32>
    %236 = vector.broadcast %228 : vector<16x1xf32> to vector<16x32xf32>
    %237 = arith.subf %224, %236 : vector<16x32xf32>
    %cst_77 = arith.constant 9.99999974E-6 : f32
    %238 = vector.broadcast %cst_77 : f32 to vector<16x1xf32>
    %239 = arith.addf %235, %238 : vector<16x1xf32>
    %240 = math.rsqrt %239 : vector<16x1xf32>
    %241 = vector.broadcast %240 : vector<16x1xf32> to vector<16x32xf32>
    %242 = arith.mulf %237, %241 : vector<16x32xf32>
    %243 = vector.broadcast %133 : vector<1x32xf32> to vector<16x32xf32>
    %244 = arith.mulf %242, %243 : vector<16x32xf32>
    %245 = vector.broadcast %134 : vector<1x32xf32> to vector<16x32xf32>
    %246 = arith.addf %244, %245 : vector<16x32xf32>
    %c0_78 = arith.constant 0 : index
    %c0_79 = arith.constant 0 : index
    %247 = vector.load %arg6[%c0_78, %c0_79] : memref<2x32xf32, #tpu.memory_space<vmem>>, vector<2x32xf32>
    %248 = vector.extract_strided_slice %247 {offsets = [0, 0], sizes = [1, 32], strides = [1, 1]} : vector<2x32xf32> to vector<1x32xf32>
    %249 = vector.extract_strided_slice %247 {offsets = [1, 0], sizes = [1, 32], strides = [1, 1]} : vector<2x32xf32> to vector<1x32xf32>
    %cst_80 = arith.constant dense<0.000000e+00> : vector<16xf32>
    %250 = vector.multi_reduction <add>, %246, %cst_80 [1] : vector<16x32xf32> to vector<16xf32>
    %251 = vector.shape_cast %250 : vector<16xf32> to vector<16x1xf32>
    %cst_81 = arith.constant 3.200000e+01 : f32
    %252 = vector.broadcast %cst_81 : f32 to vector<16x1xf32>
    %253 = arith.divf %251, %252 : vector<16x1xf32>
    %254 = vector.broadcast %253 : vector<16x1xf32> to vector<16x32xf32>
    %255 = arith.subf %246, %254 : vector<16x32xf32>
    %256 = arith.mulf %255, %255 : vector<16x32xf32>
    %cst_82 = arith.constant dense<0.000000e+00> : vector<16xf32>
    %257 = vector.multi_reduction <add>, %256, %cst_82 [1] : vector<16x32xf32> to vector<16xf32>
    %258 = vector.shape_cast %257 : vector<16xf32> to vector<16x1xf32>
    %cst_83 = arith.constant 3.200000e+01 : f32
    %259 = vector.broadcast %cst_83 : f32 to vector<16x1xf32>
    %260 = arith.divf %258, %259 : vector<16x1xf32>
    %261 = vector.broadcast %253 : vector<16x1xf32> to vector<16x32xf32>
    %262 = arith.subf %246, %261 : vector<16x32xf32>
    %cst_84 = arith.constant 9.99999974E-6 : f32
    %263 = vector.broadcast %cst_84 : f32 to vector<16x1xf32>
    %264 = arith.addf %260, %263 : vector<16x1xf32>
    %265 = math.rsqrt %264 : vector<16x1xf32>
    %266 = vector.broadcast %265 : vector<16x1xf32> to vector<16x32xf32>
    %267 = arith.mulf %262, %266 : vector<16x32xf32>
    %268 = vector.broadcast %248 : vector<1x32xf32> to vector<16x32xf32>
    %269 = arith.mulf %267, %268 : vector<16x32xf32>
    %270 = vector.broadcast %249 : vector<1x32xf32> to vector<16x32xf32>
    %271 = arith.addf %269, %270 : vector<16x32xf32>
    %c0_85 = arith.constant 0 : index
    %c0_86 = arith.constant 0 : index
    %272 = vector.load %arg7[%c0_85, %c0_86] : memref<16x32xf32, #tpu.memory_space<vmem>>, vector<16x32xf32>
    tpu.vector_store %arg7[%c0_85, %c0_86], %271 {strides = array<i32>} : memref<16x32xf32, #tpu.memory_space<vmem>>, vector<16x32xf32>,
    return
  }
  func.func @transform_0(%arg0: i32) -> (i32, i32) {
    %c0_i32 = arith.constant 0 : i32
    %c0_i32_0 = arith.constant 0 : i32
    %c0_i32_1 = arith.constant 0 : i32
    return %c0_i32, %c0_i32_0 : i32, i32
  }
  func.func @transform_1(%arg0: i32) -> (i32, i32, i32) {
    %c0_i32 = arith.constant 0 : i32
    %c0_i32_0 = arith.constant 0 : i32
    %c0_i32_1 = arith.constant 0 : i32
    %c0_i32_2 = arith.constant 0 : i32
    return %c0_i32, %c0_i32_0, %c0_i32_1 : i32, i32, i32
  }
  func.func @transform_2(%arg0: i32) -> (i32, i32, i32) {
    %c0_i32 = arith.constant 0 : i32
    %c0_i32_0 = arith.constant 0 : i32
    %c0_i32_1 = arith.constant 0 : i32
    %c0_i32_2 = arith.constant 0 : i32
    return %c0_i32, %c0_i32_0, %c0_i32_1 : i32, i32, i32
  }
  func.func @transform_3(%arg0: i32) -> (i32, i32, i32) {
    %c0_i32 = arith.constant 0 : i32
    %c0_i32_0 = arith.constant 0 : i32
    %c0_i32_1 = arith.constant 0 : i32
    %c0_i32_2 = arith.constant 0 : i32
    return %c0_i32, %c0_i32_0, %c0_i32_1 : i32, i32, i32
  }
  func.func @transform_4(%arg0: i32) -> (i32, i32, i32) {
    %c0_i32 = arith.constant 0 : i32
    %c0_i32_0 = arith.constant 0 : i32
    %c0_i32_1 = arith.constant 0 : i32
    %c0_i32_2 = arith.constant 0 : i32
    return %c0_i32, %c0_i32_0, %c0_i32_1 : i32, i32, i32
  }
  func.func @transform_5(%arg0: i32) -> (i32, i32) {
    %c0_i32 = arith.constant 0 : i32
    %c0_i32_0 = arith.constant 0 : i32
    %c0_i32_1 = arith.constant 0 : i32
    return %c0_i32, %c0_i32_0 : i32, i32
  }
  func.func @transform_6(%arg0: i32) -> (i32, i32) {
    %c0_i32 = arith.constant 0 : i32
    %c0_i32_0 = arith.constant 0 : i32
    %c0_i32_1 = arith.constant 0 : i32
    return %c0_i32, %c0_i32_0 : i32, i32
  }
}

</mosaic_0001>

<bundles_post_ra>
// kernel: _encoder_impl.1
= control target key start
LH: loop header
LB: loop body
LE: loop exit
PB: predicated region body
PF: predicated region fallthrough
CT: control target
= control target key end

     0   :  { %11 = vsyncpa [#allocation4], 0  ;;  %s3273_s0 = inlined_call_operand.hbm [shape: f32[16,32], index: 0, kind: input, shape index: {}]   ;;  %s3274_s1 = inlined_call_operand.hbm [shape: bf16[2,32,96], index: 1, kind: input, shape index: {}]   ;;  %s3275_s2 = inlined_call_operand.vmem [shape: f32[2,1,96], index: 2, kind: input, shape index: {}]   ;;  %s3276_s3 = inlined_call_operand.hbm [shape: bf16[2,32,32], index: 3, kind: input, shape index: {}]   ;;  %s3277_s4 = inlined_call_operand.vmem [shape: f32[2,3,32], index: 4, kind: input, shape index: {}]   ;;  %s3278_s5 = inlined_call_operand.vmem [shape: f32[2,32], index: 5, kind: input, shape index: {}]   ;;  %s3279_s6 = inlined_call_operand.hbm [shape: f32[16,32], index: 6, kind: output, shape index: {}]  }
   0x1   :  { %12 = vsyncpa [#allocation7], 0 }
   0x2   :  { %13 = vsyncpa [#allocation5], 0  ;;  %s2794_s21 = smov [#allocation6]  }
   0x3   :  { %s31_s22 = sshll.u32 %s2794_s21, 4  ;;  %s32_s22 = int_to_ptr.vmem [resolvable:$true] %s31_s22 }
   0x4   :  { %s2716_s23 = scalar_lea.vmem %s32_s22, 512  ;;  %p2721_p1 = scmp.lt.s32.totalorder %s32_s22, %s32_s22 }
   0x5   :  { %p2717_p0 = scmp.ne.s32.totalorder %s32_s22, %s2716_s23  ;;  %p2722_p2 = scmp.lt.s32.totalorder %s2716_s23, %s2716_s23 }
   0x7   :  { %p2723_p3 = por %p2722_p2, %p2721_p1 }
   0x9   :  { %p2724_p4 = pnand %p2723_p3, %p2717_p0 }
   0xb   :  { %2727 = shalt.err (!%p2724_p4)
}
   0xc   :  { %s2795_s24 = smov 64   ;;  %s2796_s25 = smov 4  }
   0xd   :  { %37 = dma.hbm_to_vmem [thread:$0]  %s3274_s1, 512, %s32_s22, [#allocation7], %s2795_s24, %s2795_s24, %s2796_s25  }
   0xe   :  { %s2797_s28 = smov [#allocation3]  }
   0xf   :  { %s19_s29 = sshll.u32 %s2797_s28, 4  ;;  %s20_s29 = int_to_ptr.vmem [resolvable:$true] %s19_s29 }
  0x10   :  { %s2736_s30 = scalar_lea.vmem %s20_s29, 256  ;;  %p2741_p6 = scmp.lt.s32.totalorder %s20_s29, %s20_s29 }
  0x11   :  { %p2737_p5 = scmp.ne.s32.totalorder %s20_s29, %s2736_s30  ;;  %p2742_p7 = scmp.lt.s32.totalorder %s2736_s30, %s2736_s30 }
  0x13   :  { %p2743_p8 = por %p2742_p7, %p2741_p6 }
  0x15   :  { %p2744_p9 = pnand %p2743_p8, %p2737_p5 }
  0x17   :  { %2747 = shalt.err (!%p2744_p9)
}
  0x18   :  { %s2798_s7 = smov 128   ;;  %s2799_s8 = smov 8  }
  0x19   :  { %25 = dma.hbm_to_vmem [thread:$0]  %s3273_s0, 256, %s20_s29, [#allocation4], %s2798_s7, %s2798_s7, %s2799_s8  }
  0x1a   :  { %s2800_s1 = smov [#allocation8]  }
  0x1b   :  { %s45_s11 = sshll.u32 %s2800_s1, 4  ;;  %s46_s11 = int_to_ptr.vmem [resolvable:$true] %s45_s11 }
  0x1c   :  { %s2756_s12 = scalar_lea.vmem %s46_s11, 512  ;;  %p2761_p11 = scmp.lt.s32.totalorder %s46_s11, %s46_s11 }
  0x1d   :  { %p2757_p10 = scmp.ne.s32.totalorder %s46_s11, %s2756_s12  ;;  %p2762_p12 = scmp.lt.s32.totalorder %s2756_s12, %s2756_s12 }
  0x1f   :  { %p2763_p13 = por %p2762_p12, %p2761_p11 }
  0x21   :  { %p2764_p0 = pnand %p2763_p13, %p2757_p10 }
  0x23   :  { %2767 = shalt.err (!%p2764_p0)
}
  0x24   :  { %51 = dma.hbm_to_vmem [thread:$0]  %s3276_s3, 512, %s46_s11, [#allocation7], %s2795_s24, %s2795_s24, %s2796_s25  }
  0x25   :  { %2788 = dma.done.wait [#allocation4], 256  }
  0x26   :  { %2789 = vsyncadd [#allocation4], 4294967040 }
  0x27   :  { %2790 = dma.done.wait [#allocation7], 1024  }
  0x28   :  { %2791 = vsyncadd [#allocation7], 4294966272  ;;  %v2801_v0 = vmov 0.0   ;;  %vm2802_vm0 = vmmov 0   ;;  %v2624_v1 = vld [vmem:[#allocation6 + $0x8] sm:$0xff]   ;;  %v2625_v2 = vld [vmem:[#allocation6] sm:$0xff]  }
  0x29   :  { %2378 = vmatprep.subr.bf16.mxu0 %v2801_v0  ;;  %2382 = vmatprep.mubr.msk.bf16.mxu0 %vm2802_vm0, %v2801_v0  ;;  %v2873_v3 = vld [vmem:[#allocation3] sm:$0xff]  ;;  %v2875_v4 = vld [vmem:[#allocation3 + $0x8] sm:$0xff]  ;;  %vm97_vm1 = vcmask 261120   ;;  %v2254_v6 = vld [vmem:[%s3275_s2] ss:$0 sm:$0xff]  ;;  %s2803_s15 = smov 96  }
  0x2a   :  { %2386 = vmatprep.subr.bf16.mxu1 %v2801_v0  ;;  %2388 = vmatprep.mubr.msk.bf16.mxu1 %vm2802_vm0, %v2801_v0  ;;  %v78_v5 = vpack.c.bf16 %v2875_v4, %v2873_v3  ;;  %s2804_s16 = smov 88   ;;  %s2805_s17 = smov 120   ;;  %vm147_vm2 = vcmask 64512   ;;  %vm264_vm3 = vcmask 1043456   ;;  %vm578_vm4 = vcmask 130112  }
  0x2b   :  { %2379 = vmatpush3.bf16.msra.mxu0 %v2624_v1  ;;  %s2806_s18 = smov 56   ;;  %s2807_s19 = smov 80   ;;  %vm801_vm5 = vcmask 195712   ;;  %vm1024_vm6 = vcmask 261312  }
  0x2c   :  { %2380 = vmatprep.subr.bf16.mxu0 %v2801_v0  ;;  %s2808_s20 = smov 112   ;;  %s2809_s21 = smov 48  }
  0x2d   :  { %s2810_s22 = smov 72   ;;  %s2811_s23 = smov 104  }
  0x2e   :  { %s2812_s25 = smov 40   ;;  %s2813_s26 = smov 16  }
  0x2f   :  { %2381 = vmatpush3.bf16.msra.mxu0 %v2625_v2  ;;  %s2814_s27 = smov 24   ;;  %s2815_s1 = smov [#allocation9]  }
  0x30   :  { %2392 = vmatprep.subr.bf16.mxu0 %v2801_v0  ;;  %s2241_s11 = sshll.u32 %s2815_s1, 4  ;;  %s2242_s11 = int_to_ptr.vmem [resolvable:$true] %s2241_s11 }
  0x31   :  { %p2773_p2 = scmp.lt.s32.totalorder %s2242_s11, %s2242_s11 }
  0x32   :  { %2383 = vmatmul.mubr.msk.bf16.vlgmr.msra.gmra.mxu0 %vm97_vm1, %v78_v5 }
  0x33   :  { %2394 = vmatprep.mubr.msk.bf16.mxu0 %vm2802_vm0, %v2801_v0 }
  0xf2   :  { %v135_v7 = vpop.f32.mrf.mxu0 }
  0xf3   :  { %v136_v8 = vadd.f32 %v2254_v6, %v135_v7 }
  0xf4   :  { %v2384_v9 = vpop.f32.mrf.mxu0 }
  0xf5   :  { %v2887_v10 = vpack.c.bf16 %v136_v8, %v136_v8 }
  0xf6   :  { %v138_v11 = vpop.f32.mrf.mxu0 }
  0xf7   :  { %v139_v12 = vadd.f32 %v2254_v6, %v138_v11  ;;  %145 = vrot.lane.b32.xlu0 %v2887_v10, %s2803_s15 }
  0xf8   :  { %v2385_v13 = vpop.f32.mrf.mxu0 }
  0xf9   :  { %v2891_v14 = vpack.c.bf16 %v139_v12, %v139_v12 }
  0xfb   :  { %195 = vrot.lane.b32.xlu0 %v2891_v14, %s2803_s15 }
  0xff   :  { %259 = vrot.lane.b32.xlu0 %v2887_v10, %s2795_s24 }
 0x103   :  { %360 = vrot.lane.b32.xlu0 %v2887_v10, %s2804_s16 }
 0x107   :  { %410 = vrot.lane.b32.xlu0 %v2891_v14, %s2804_s16 }
 0x10b   :  { %358 = vrot.lane.b32.xlu0 %v2887_v10, %s2805_s17 }
 0x10f   :  { %408 = vrot.lane.b32.xlu0 %v2891_v14, %s2805_s17 }
 0x113   :  { %474 = vrot.lane.b32.xlu0 %v2887_v10, %s2806_s18 }
 0x169   :  { %v146_v15 = vpop.permute.xlu0 %145 }
 0x16a   :  { %v152_v16 = vsel %vm147_vm2, %v146_v15, 0 }
 0x16b   :  { %2387 = vmatpush3.bf16.xpose.msra.mxu1 %v152_v16 }
 0x16c   :  { %2398 = vmatprep.subr.bf16.mxu1 %v2801_v0 }
 0x16d   :  { %v196_v17 = vpop.permute.xlu0 %195 }
 0x16e   :  { %v201_v18 = vsel %vm147_vm2, %v196_v17, 0 }
 0x16f   :  { %2393 = vmatpush3.bf16.xpose.msra.mxu0 %v201_v18 }
 0x170   :  { %2404 = vmatprep.subr.bf16.mxu0 %v2801_v0 }
 0x171   :  { %v260_v19 = vpop.permute.xlu0 %259 }
 0x172   :  { %v266_v20 = vsel %vm264_vm3, %v260_v19, 0  ;;  %2389 = vmatmul.mubr.msk.bf16.vlgmr.msra.gmra.mxu1 %vm147_vm2, %v2887_v10 }
 0x173   :  { %2399 = vmatpush3.bf16.msra.mxu1 %v266_v20  ;;  %2400 = vmatprep.mubr.msk.bf16.mxu1 %vm2802_vm0, %v2801_v0 }
 0x174   :  { %2410 = vmatprep.subr.bf16.mxu1 %v2801_v0 }
 0x175   :  { %v361_v35 = vpop.permute.xlu0 %360 }
 0x176   :  { %2395 = vmatmul.mubr.msk.bf16.vlgmr.msra.gmra.mxu0 %vm147_vm2, %v2891_v14  ;;  %v366_v47 = vsel %vm147_vm2, %v361_v35, 0 }
 0x177   :  { %2406 = vmatprep.mubr.msk.bf16.mxu0 %vm2802_vm0, %v2801_v0 }
 0x179   :  { %v411_v38 = vpop.permute.xlu0 %410 }
 0x17a   :  { %v416_v50 = vsel %vm147_vm2, %v411_v38, 0 }
 0x17d   :  { %v359_v41 = vpop.permute.xlu0 %358 }
 0x181   :  { %v409_v46 = vpop.permute.xlu0 %408 }
 0x185   :  { %v475_v51 = vpop.permute.xlu0 %474 }
 0x186   :  { %v480_v52 = vsel %vm264_vm3, %v475_v51, 0 }
 0x232   :  { %v188_v21 = vpop.f32.mrf.mxu1 }
 0x233   :  { %v243_v22 = vmul.f32 1.442695, %v188_v21 }
 0x234   :  { %v2390_v23 = vpop.f32.mrf.mxu1 }
 0x235   :  { %2632 = vpow2.f32 %v243_v22 }
 0x236   :  { %v191_v24 = vpop.f32.mrf.mxu1  ;;  %v237_v25 = vpop.f32.mrf.mxu0 }
 0x237   :  { %v245_v26 = vmul.f32 1.442695, %v237_v25 }
 0x238   :  { %v2391_v27 = vpop.f32.mrf.mxu1  ;;  %v2396_v28 = vpop.f32.mrf.mxu0 }
 0x239   :  { %2634 = vpow2.f32 %v245_v26 }
 0x23a   :  { %v240_v29 = vpop.f32.mrf.mxu0 }
 0x23c   :  { %v2397_v30 = vpop.f32.mrf.mxu0 }
 0x242   :  { %v2633_v31 = vpop.eup %2632 }
 0x243   :  { %v247_v32 = vsel %vm147_vm2, %v2633_v31, 0.0 }
 0x244   :  { %248 = vadd.xlane.f32.xlu1 %v247_v32 }
 0x246   :  { %v2635_v33 = vpop.eup %2634 }
 0x247   :  { %v250_v34 = vsel %vm147_vm2, %v2635_v33, 0.0 }
 0x248   :  { %251 = vadd.xlane.f32.xlu1 %v250_v34 }
 0x259   :  { %308 = vrot.lane.b32.xlu1 %v2891_v14, %s2795_s24 }
 0x25d   :  { %522 = vrot.lane.b32.xlu1 %v2891_v14, %s2806_s18 }
 0x2cd   :  { %v249_v36 = vpop.xlane.xlu1 %248 }
 0x2ce   :  { %2636 = vrcp.f32 %v249_v36 }
 0x2d1   :  { %v252_v37 = vpop.xlane.xlu1 %251 }
 0x2d2   :  { %2638 = vrcp.f32 %v252_v37 }
 0x2d5   :  { %v309_v39 = vpop.permute.xlu1 %308 }
 0x2d6   :  { %v314_v40 = vsel %vm264_vm3, %v309_v39, 0 }
 0x2d7   :  { %2405 = vmatpush3.bf16.msra.mxu0 %v314_v40 }
 0x2d8   :  { %2416 = vmatprep.subr.bf16.mxu0 %v2801_v0 }
 0x2d9   :  { %v523_v53 = vpop.permute.xlu1 %522 }
 0x2da   :  { %v528_v54 = vsel %vm264_vm3, %v523_v53, 0 }
 0x2db   :  { %v2637_v42 = vpop.eup %2636 }
 0x2dc   :  { %v255_v43 = vmul.f32 %v2637_v42, %v2633_v31 }
 0x2de   :  { %v257_v44 = vpack.c.bf16 %v255_v43, %v255_v43 }
 0x2df   :  { %v2639_v45 = vpop.eup %2638 }
 0x2e0   :  { %2401 = vmatmul.mubr.msk.bf16.vlgmr.msra.gmra.mxu1 %vm147_vm2, %v257_v44  ;;  %v256_v48 = vmul.f32 %v2639_v45, %v2635_v33 }
 0x2e1   :  { %2411 = vmatpush3.bf16.xpose.msra.mxu1 %v366_v47  ;;  %2412 = vmatprep.mubr.msk.bf16.mxu1 %vm2802_vm0, %v2801_v0 }
 0x2e2   :  { %v258_v49 = vpack.c.bf16 %v256_v48, %v256_v48  ;;  %2422 = vmatprep.subr.bf16.mxu1 %v2801_v0 }
 0x2e4   :  { %2407 = vmatmul.mubr.msk.bf16.vlgmr.msra.gmra.mxu0 %vm147_vm2, %v258_v49 }
 0x2e5   :  { %2417 = vmatpush3.bf16.xpose.msra.mxu0 %v416_v50  ;;  %2418 = vmatprep.mubr.msk.bf16.mxu0 %vm2802_vm0, %v2801_v0 }
 0x2e6   :  { %2428 = vmatprep.subr.bf16.mxu0 %v2801_v0 }
 0x2e8   :  { %2413 = vmatmul.mubr.msk.bf16.vlgmr.msra.gmra.mxu1 %vm147_vm2, %v359_v41 }
 0x2e9   :  { %2423 = vmatpush3.bf16.msra.mxu1 %v480_v52  ;;  %2424 = vmatprep.mubr.msk.bf16.mxu1 %vm2802_vm0, %v2801_v0 }
 0x2ea   :  { %2434 = vmatprep.subr.bf16.mxu1 %v2801_v0 }
 0x2ec   :  { %2419 = vmatmul.mubr.msk.bf16.vlgmr.msra.gmra.mxu0 %vm147_vm2, %v409_v46 }
 0x2ed   :  { %2429 = vmatpush3.bf16.msra.mxu0 %v528_v54  ;;  %2430 = vmatprep.mubr.msk.bf16.mxu0 %vm2802_vm0, %v2801_v0 }
 0x2ee   :  { %2440 = vmatprep.subr.bf16.mxu0 %v2801_v0 }
 0x3a0   :  { %v302_v55 = vpop.f32.mrf.mxu1 }
 0x3a1   :  { %356 = vst.msk [vmem:[#allocation2] sm:$0xff] %vm147_vm2, %v302_v55 }
 0x3a2   :  { %v2402_v56 = vpop.f32.mrf.mxu1 }
 0x3a4   :  { %v305_v57 = vpop.f32.mrf.mxu1  ;;  %v350_v58 = vpop.f32.mrf.mxu0 }
 0x3a5   :  { %357 = vst.msk [vmem:[#allocation2 + $0x8] sm:$0xff] %vm147_vm2, %v350_v58 }
 0x3a6   :  { %v2403_v59 = vpop.f32.mrf.mxu1  ;;  %v2408_v60 = vpop.f32.mrf.mxu0 }
 0x3a8   :  { %v353_v61 = vpop.f32.mrf.mxu0  ;;  %v402_v62 = vpop.f32.mrf.mxu1 }
 0x3a9   :  { %v458_v63 = vmul.f32 1.442695, %v402_v62 }
 0x3aa   :  { %v2409_v1 = vpop.f32.mrf.mxu0  ;;  %v2414_v2 = vpop.f32.mrf.mxu1 }
 0x3ab   :  { %2640 = vpow2.f32 %v458_v63 }
 0x3ac   :  { %v405_v5 = vpop.f32.mrf.mxu1  ;;  %v452_v6 = vpop.f32.mrf.mxu0 }
 0x3ad   :  { %v460_v7 = vmul.f32 1.442695, %v452_v6 }
 0x3ae   :  { %v2415_v8 = vpop.f32.mrf.mxu1  ;;  %v2420_v9 = vpop.f32.mrf.mxu0 }
 0x3af   :  { %2642 = vpow2.f32 %v460_v7 }
 0x3b0   :  { %v455_v11 = vpop.f32.mrf.mxu0 }
 0x3b2   :  { %v2421_v12 = vpop.f32.mrf.mxu0 }
 0x3b8   :  { %v2641_v13 = vpop.eup %2640 }
 0x3b9   :  { %v462_v15 = vsel %vm147_vm2, %v2641_v13, 0.0 }
 0x3ba   :  { %463 = vadd.xlane.f32.xlu1 %v462_v15 }
 0x3bc   :  { %v2643_v16 = vpop.eup %2642 }
 0x3bd   :  { %v465_v17 = vsel %vm147_vm2, %v2643_v16, 0.0 }
 0x3be   :  { %466 = vadd.xlane.f32.xlu0 %v465_v17 }
 0x3cb   :  { %583 = vrot.lane.b32.xlu1 %v2887_v10, %s2807_s19 }
 0x3cf   :  { %581 = vrot.lane.b32.xlu1 %v2887_v10, %s2808_s20 }
 0x3d3   :  { %745 = vrot.lane.b32.xlu1 %v2891_v14, %s2809_s21 }
 0x3d4   :  { %633 = vrot.lane.b32.xlu0 %v2891_v14, %s2807_s19 }
 0x3d8   :  { %631 = vrot.lane.b32.xlu0 %v2891_v14, %s2808_s20 }
 0x3dc   :  { %697 = vrot.lane.b32.xlu0 %v2887_v10, %s2809_s21 }
 0x443   :  { %v464_v18 = vpop.xlane.xlu1 %463 }
 0x444   :  { %2644 = vrcp.f32 %v464_v18 }
 0x447   :  { %v467_v19 = vpop.xlane.xlu0 %466  ;;  %v584_v23 = vpop.permute.xlu1 %583 }
 0x448   :  { %2646 = vrcp.f32 %v467_v19  ;;  %v589_v27 = vsel %vm147_vm2, %v584_v23, 0 }
 0x44b   :  { %v634_v20 = vpop.permute.xlu0 %633  ;;  %v582_v30 = vpop.permute.xlu1 %581 }
 0x44c   :  { %v639_v31 = vsel %vm147_vm2, %v634_v20, 0 }
 0x44f   :  { %v632_v26 = vpop.permute.xlu0 %631  ;;  %v746_v34 = vpop.permute.xlu1 %745 }
 0x450   :  { %v751_v35 = vsel %vm264_vm3, %v746_v34, 0 }
 0x451   :  { %v2645_v21 = vpop.eup %2644 }
 0x452   :  { %v470_v22 = vmul.f32 %v2645_v21, %v2641_v13 }
 0x453   :  { %v698_v32 = vpop.permute.xlu0 %697 }
 0x454   :  { %v472_v24 = vpack.c.bf16 %v470_v22, %v470_v22  ;;  %v703_v33 = vsel %vm264_vm3, %v698_v32, 0 }
 0x455   :  { %v2647_v25 = vpop.eup %2646 }
 0x456   :  { %2425 = vmatmul.mubr.msk.bf16.vlgmr.msra.gmra.mxu1 %vm147_vm2, %v472_v24  ;;  %v471_v28 = vmul.f32 %v2647_v25, %v2643_v16 }
 0x457   :  { %2435 = vmatpush3.bf16.xpose.msra.mxu1 %v589_v27  ;;  %2436 = vmatprep.mubr.msk.bf16.mxu1 %vm2802_vm0, %v2801_v0 }
 0x458   :  { %v473_v29 = vpack.c.bf16 %v471_v28, %v471_v28  ;;  %2446 = vmatprep.subr.bf16.mxu1 %v2801_v0 }
 0x45a   :  { %2431 = vmatmul.mubr.msk.bf16.vlgmr.msra.gmra.mxu0 %vm147_vm2, %v473_v29 }
 0x45b   :  { %2441 = vmatpush3.bf16.xpose.msra.mxu0 %v639_v31  ;;  %2442 = vmatprep.mubr.msk.bf16.mxu0 %vm2802_vm0, %v2801_v0 }
 0x45c   :  { %2452 = vmatprep.subr.bf16.mxu0 %v2801_v0 }
 0x45e   :  { %2437 = vmatmul.mubr.msk.bf16.vlgmr.msra.gmra.mxu1 %vm147_vm2, %v582_v30 }
 0x45f   :  { %2447 = vmatpush3.bf16.msra.mxu1 %v703_v33  ;;  %2448 = vmatprep.mubr.msk.bf16.mxu1 %vm2802_vm0, %v2801_v0 }
 0x460   :  { %2458 = vmatprep.subr.bf16.mxu1 %v2801_v0 }
 0x462   :  { %2443 = vmatmul.mubr.msk.bf16.vlgmr.msra.gmra.mxu0 %vm147_vm2, %v632_v26 }
 0x463   :  { %2453 = vmatpush3.bf16.msra.mxu0 %v751_v35  ;;  %2454 = vmatprep.mubr.msk.bf16.mxu0 %vm2802_vm0, %v2801_v0 }
 0x464   :  { %2464 = vmatprep.subr.bf16.mxu0 %v2801_v0 }
 0x516   :  { %v2985_v36 = vpop.f32.mrf.mxu1 }
 0x518   :  { %v2426_v37 = vpop.f32.mrf.mxu1 }
 0x51a   :  { %v519_v38 = vpop.f32.mrf.mxu1  ;;  %v2987_v39 = vpop.f32.mrf.mxu0 }
 0x51c   :  { %v2427_v40 = vpop.f32.mrf.mxu1  ;;  %v2432_v41 = vpop.f32.mrf.mxu0 }
 0x51e   :  { %v567_v42 = vpop.f32.mrf.mxu0  ;;  %v625_v43 = vpop.f32.mrf.mxu1 }
 0x51f   :  { %v681_v44 = vmul.f32 1.442695, %v625_v43 }
 0x520   :  { %v2433_v45 = vpop.f32.mrf.mxu0  ;;  %v2438_v46 = vpop.f32.mrf.mxu1 }
 0x521   :  { %2648 = vpow2.f32 %v681_v44 }
 0x522   :  { %v628_v47 = vpop.f32.mrf.mxu1  ;;  %v675_v48 = vpop.f32.mrf.mxu0 }
 0x523   :  { %v683_v49 = vmul.f32 1.442695, %v675_v48 }
 0x524   :  { %v2439_v50 = vpop.f32.mrf.mxu1  ;;  %v2444_v51 = vpop.f32.mrf.mxu0 }
 0x525   :  { %2650 = vpow2.f32 %v683_v49  ;;  %v2626_v49 = vld [vmem:[#allocation8 + $0x8] sm:$0xff]   ;;  %v2627_v50 = vld [vmem:[#allocation8] sm:$0xff]  }
 0x526   :  { %v678_v52 = vpop.f32.mrf.mxu0 }
 0x528   :  { %v2445_v53 = vpop.f32.mrf.mxu0 }
 0x52e   :  { %v2649_v54 = vpop.eup %2648 }
 0x52f   :  { %v685_v55 = vsel %vm147_vm2, %v2649_v54, 0.0 }
 0x530   :  { %686 = vadd.xlane.f32.xlu1 %v685_v55 }
 0x532   :  { %v2651_v56 = vpop.eup %2650 }
 0x533   :  { %v688_v57 = vsel %vm147_vm2, %v2651_v56, 0.0 }
 0x534   :  { %689 = vadd.xlane.f32.xlu0 %v688_v57 }
 0x541   :  { %806 = vrot.lane.b32.xlu1 %v2887_v10, %s2810_s22 }
 0x545   :  { %804 = vrot.lane.b32.xlu1 %v2887_v10, %s2811_s23 }
 0x54a   :  { %856 = vrot.lane.b32.xlu0 %v2891_v14, %s2810_s22 }
 0x54e   :  { %854 = vrot.lane.b32.xlu0 %v2891_v14, %s2811_s23 }
 0x5b9   :  { %v687_v58 = vpop.xlane.xlu1 %686 }
 0x5ba   :  { %2652 = vrcp.f32 %v687_v58 }
 0x5bd   :  { %v690_v59 = vpop.xlane.xlu0 %689  ;;  %v807_v62 = vpop.permute.xlu1 %806 }
 0x5be   :  { %2654 = vrcp.f32 %v690_v59  ;;  %v812_v2 = vsel %vm147_vm2, %v807_v62, 0 }
 0x5c1   :  { %v857_v6 = vpop.permute.xlu0 %856  ;;  %v805_v9 = vpop.permute.xlu1 %804 }
 0x5c2   :  { %v862_v8 = vsel %vm147_vm2, %v857_v6, 0  ;;  %v77_v6 = vld [vmem:[%s3277_s4] sm:$0x7] }
 0x5c5   :  { %v855_v11 = vpop.permute.xlu0 %854 }
 0x5c7   :  { %v2653_v60 = vpop.eup %2652 }
 0x5c8   :  { %v693_v61 = vmul.f32 %v2653_v60, %v2649_v54 }
 0x5ca   :  { %v695_v63 = vpack.c.bf16 %v693_v61, %v693_v61 }
 0x5cb   :  { %v2655_v1 = vpop.eup %2654 }
 0x5cc   :  { %2449 = vmatmul.mubr.msk.bf16.vlgmr.msra.gmra.mxu1 %vm147_vm2, %v695_v63  ;;  %v694_v5 = vmul.f32 %v2655_v1, %v2651_v56  ;;  %v1088_v1 = vlaneseq }
 0x5cd   :  { %2459 = vmatpush3.bf16.xpose.msra.mxu1 %v812_v2  ;;  %2460 = vmatprep.mubr.msk.bf16.mxu1 %vm2802_vm0, %v2801_v0 }
 0x5ce   :  { %v696_v7 = vpack.c.bf16 %v694_v5, %v694_v5  ;;  %2470 = vmatprep.subr.bf16.mxu1 %v2801_v0  ;;  %v3050_v2 = vshrl.u32 %v1088_v1, 7 }
 0x5d0   :  { %2455 = vmatmul.mubr.msk.bf16.vlgmr.msra.gmra.mxu0 %vm147_vm2, %v696_v7  ;;  %v3053_v5 = vsub.s32 0, %v3050_v2 }
 0x5d1   :  { %2465 = vmatpush3.bf16.xpose.msra.mxu0 %v862_v8  ;;  %2466 = vmatprep.mubr.msk.bf16.mxu0 %vm2802_vm0, %v2801_v0 }
 0x5d2   :  { %2476 = vmatprep.subr.bf16.mxu0 %v2801_v0  ;;  %v1091_v7 = vrot.slane %v77_v6, %v3053_v5 }
 0x5d4   :  { %2461 = vmatmul.mubr.msk.bf16.vlgmr.msra.gmra.mxu1 %vm147_vm2, %v805_v9 }
 0x5d5   :  { %2472 = vmatprep.mubr.msk.bf16.mxu1 %vm2802_vm0, %v2801_v0 }
 0x5d8   :  { %2467 = vmatmul.mubr.msk.bf16.vlgmr.msra.gmra.mxu0 %vm147_vm2, %v855_v11 }
 0x5d9   :  { %2478 = vmatprep.mubr.msk.bf16.mxu0 %vm2802_vm0, %v2801_v0 }
 0x68c   :  { %v739_v12 = vpop.f32.mrf.mxu1 }
 0x68e   :  { %v2450_v13 = vpop.f32.mrf.mxu1 }
 0x690   :  { %v742_v15 = vpop.f32.mrf.mxu1  ;;  %v787_v16 = vpop.f32.mrf.mxu0 }
 0x692   :  { %v2451_v17 = vpop.f32.mrf.mxu1  ;;  %v2456_v18 = vpop.f32.mrf.mxu0 }
 0x694   :  { %v790_v19 = vpop.f32.mrf.mxu0  ;;  %v848_v20 = vpop.f32.mrf.mxu1 }
 0x695   :  { %v904_v21 = vmul.f32 1.442695, %v848_v20 }
 0x696   :  { %v2457_v22 = vpop.f32.mrf.mxu0  ;;  %v2462_v23 = vpop.f32.mrf.mxu1 }
 0x697   :  { %2656 = vpow2.f32 %v904_v21 }
 0x698   :  { %v851_v24 = vpop.f32.mrf.mxu1  ;;  %v898_v25 = vpop.f32.mrf.mxu0 }
 0x699   :  { %v906_v26 = vmul.f32 1.442695, %v898_v25 }
 0x69a   :  { %v2463_v27 = vpop.f32.mrf.mxu1  ;;  %v2468_v28 = vpop.f32.mrf.mxu0 }
 0x69b   :  { %2658 = vpow2.f32 %v906_v26  ;;  %v2628_v28 = vld [vmem:[#allocation6 + $0x18] sm:$0xff]  }
 0x69c   :  { %v901_v29 = vpop.f32.mrf.mxu0 }
 0x69d   :  { %v2629_v29 = vld [vmem:[#allocation6 + $0x10] sm:$0xff]  }
 0x69e   :  { %v2469_v30 = vpop.f32.mrf.mxu0 }
 0x6a4   :  { %v2657_v31 = vpop.eup %2656 }
 0x6a5   :  { %v908_v32 = vsel %vm147_vm2, %v2657_v31, 0.0 }
 0x6a6   :  { %909 = vadd.xlane.f32.xlu1 %v908_v32 }
 0x6a8   :  { %v2659_v33 = vpop.eup %2658 }
 0x6a9   :  { %v911_v34 = vsel %vm147_vm2, %v2659_v33, 0.0 }
 0x6aa   :  { %912 = vadd.xlane.f32.xlu0 %v911_v34 }
 0x6b7   :  { %968 = vrot.lane.b32.xlu1 %v2891_v14, %s2812_s25 }
 0x6bb   :  { %572 = vrot.lane.b32.xlu1 %v2985_v36, %s2799_s8 }
 0x6bf   :  { %795 = vrot.lane.b32.xlu1 %v739_v12, %s2813_s26 }
 0x6c0   :  { %920 = vrot.lane.b32.xlu0 %v2887_v10, %s2812_s25 }
 0x6c4   :  { %574 = vrot.lane.b32.xlu0 %v2987_v39, %s2799_s8 }
 0x6c8   :  { %797 = vrot.lane.b32.xlu0 %v787_v16, %s2813_s26 }
 0x72f   :  { %v910_v35 = vpop.xlane.xlu1 %909 }
 0x730   :  { %2660 = vrcp.f32 %v910_v35 }
 0x733   :  { %v969_v37 = vpop.permute.xlu1 %968  ;;  %v913_v38 = vpop.xlane.xlu0 %912 }
 0x734   :  { %v974_v14 = vsel %vm264_vm3, %v969_v37, 0  ;;  %2662 = vrcp.f32 %v913_v38  ;;  %v3068_v37 = vsub.s32 1, %v3050_v2 }
 0x735   :  { %2477 = vmatpush3.bf16.msra.mxu0 %v974_v14 }
 0x736   :  { %2490 = vmatprep.subr.bf16.mxu0 %v2801_v0  ;;  %v1124_v14 = vrot.slane %v77_v6, %v3068_v37 }
 0x737   :  { %v573_v36 = vpop.permute.xlu1 %572  ;;  %v921_v40 = vpop.permute.xlu0 %920 }
 0x738   :  { %579 = vst.msk [vmem:[#allocation2] sm:$0xff] %vm578_vm4, %v573_v36  ;;  %v926_v10 = vsel %vm264_vm3, %v921_v40, 0  ;;  %v1129_v36 = vsub.s32 2, %v3050_v2 }
 0x739   :  { %2471 = vmatpush3.bf16.msra.mxu1 %v926_v10 }
 0x73a   :  { %2482 = vmatprep.subr.bf16.mxu1 %v2801_v0 }
 0x73b   :  { %v796_v39 = vpop.permute.xlu1 %795  ;;  %v575_v41 = vpop.permute.xlu0 %574 }
 0x73c   :  { %802 = vst.msk [vmem:[#allocation2] sm:$0xff] %vm801_vm5, %v796_v39  ;;  %v1130_v39 = vrot.slane %v77_v6, %v1129_v36 }
 0x73d   :  { %580 = vst.msk [vmem:[#allocation2 + $0x8] sm:$0xff] %vm578_vm4, %v575_v41  ;;  %v2661_v42 = vpop.eup %2660 }
 0x73e   :  { %v916_v43 = vmul.f32 %v2661_v42, %v2657_v31 }
 0x73f   :  { %v798_v44 = vpop.permute.xlu0 %797 }
 0x740   :  { %803 = vst.msk [vmem:[#allocation2 + $0x8] sm:$0xff] %vm801_vm5, %v798_v44  ;;  %v918_v45 = vpack.c.bf16 %v916_v43, %v916_v43 }
 0x741   :  { %v2663_v46 = vpop.eup %2662 }
 0x742   :  { %2473 = vmatmul.mubr.msk.bf16.vlgmr.msra.gmra.mxu1 %vm147_vm2, %v918_v45  ;;  %v917_v47 = vmul.f32 %v2663_v46, %v2659_v33 }
 0x743   :  { %2486 = vmatprep.mubr.msk.bf16.mxu1 %vm2802_vm0, %v2801_v0  ;;  %2483 = vmatpush3.bf16.msra.mxu1 %v2626_v49 }
 0x744   :  { %v919_v48 = vpack.c.bf16 %v917_v47, %v917_v47  ;;  %2484 = vmatprep.subr.bf16.mxu1 %v2801_v0  ;;  %v2279_v47 = vld [vmem:[%s3275_s2 + $0x1] ss:$0 sm:$0xff] }
 0x746   :  { %2479 = vmatmul.mubr.msk.bf16.vlgmr.msra.gmra.mxu0 %vm147_vm2, %v919_v48 }
 0x747   :  { %2494 = vmatprep.mubr.msk.bf16.mxu0 %vm2802_vm0, %v2801_v0  ;;  %2485 = vmatpush3.bf16.msra.mxu1 %v2627_v50 }
 0x748   :  { %2498 = vmatprep.subr.bf16.mxu1 %v2801_v0  ;;  %2491 = vmatpush3.bf16.msra.mxu0 %v2628_v28 }
 0x749   :  { %2492 = vmatprep.subr.bf16.mxu0 %v2801_v0 }
 0x74c   :  { %2493 = vmatpush3.bf16.msra.mxu0 %v2629_v29 }
 0x74d   :  { %2504 = vmatprep.subr.bf16.mxu0 %v2801_v0 }
 0x802   :  { %v962_v51 = vpop.f32.mrf.mxu1 }
 0x803   :  { %1018 = vrot.lane.b32.xlu1 %v962_v51, %s2814_s27 }
 0x804   :  { %v2474_v52 = vpop.f32.mrf.mxu1 }
 0x806   :  { %v965_v53 = vpop.f32.mrf.mxu1  ;;  %v1010_v54 = vpop.f32.mrf.mxu0 }
 0x807   :  { %1020 = vrot.lane.b32.xlu0 %v1010_v54, %s2814_s27 }
 0x808   :  { %v2475_v55 = vpop.f32.mrf.mxu1  ;;  %v2480_v56 = vpop.f32.mrf.mxu0 }
 0x80a   :  { %v1013_v57 = vpop.f32.mrf.mxu0 }
 0x80c   :  { %v2481_v58 = vpop.f32.mrf.mxu0 }
 0x875   :  { %v1019_v59 = vpop.permute.xlu1 %1018 }
 0x876   :  { %1025 = vst.msk [vmem:[#allocation2] sm:$0xff] %vm1024_vm6, %v1019_v59 }
 0x879   :  { %v1021_v60 = vpop.permute.xlu0 %1020 }
 0x87a   :  { %1026 = vst.msk [vmem:[#allocation2 + $0x8] sm:$0xff] %vm1024_vm6, %v1021_v60 }
 0x87d   :  { %v1027_v61 = vld [vmem:[#allocation2] sm:$0xff] }
 0x881   :  { %v1028_v62 = vld [vmem:[#allocation2 + $0x8] sm:$0xff] }
 0x882   :  { %v1029_v63 = vpack.c.bf16 %v1028_v62, %v1027_v61 }
 0x884   :  { %2487 = vmatmul.mubr.msk.bf16.vlgmr.msra.gmra.mxu1 %vm97_vm1, %v1029_v63 }
 0x885   :  { %2500 = vmatprep.mubr.msk.bf16.mxu1 %vm2802_vm0, %v2801_v0 }
 0x944   :  { %v1079_v8 = vpop.f32.mrf.mxu1 }
 0x945   :  { %v1086_v9 = vadd.f32 %v1079_v8, %v2873_v3 }
 0x946   :  { %v2488_v11 = vpop.f32.mrf.mxu1 }
 0x947   :  { %v1092_v12 = vadd.f32 %v1091_v7, %v1086_v9 }
 0x948   :  { %v1082_v13 = vpop.f32.mrf.mxu1 }
 0x949   :  { %v1087_v15 = vadd.f32 %v1082_v13, %v2875_v4  ;;  %v1094_v16 = vsel %vm97_vm1, %v1092_v12, 0.0 }
 0x94a   :  { %1095 = vadd.xlane.f32.xlu1 %v1094_v16  ;;  %v2489_v17 = vpop.f32.mrf.mxu1 }
 0x94b   :  { %v1093_v18 = vadd.f32 %v1091_v7, %v1087_v15 }
 0x94d   :  { %v1097_v19 = vsel %vm97_vm1, %v1093_v18, 0.0 }
 0x94e   :  { %1098 = vadd.xlane.f32.xlu0 %v1097_v19 }
 0x9d3   :  { %v1096_v20 = vpop.xlane.xlu1 %1095 }
 0x9d4   :  { %v1101_v21 = vmul.f32 0.03125, %v1096_v20 }
 0x9d6   :  { %v1103_v22 = vsub.f32 %v1092_v12, %v1101_v21 }
 0x9d7   :  { %v1099_v23 = vpop.xlane.xlu0 %1098 }
 0x9d8   :  { %v1102_v24 = vmul.f32 0.03125, %v1099_v23  ;;  %v1105_v25 = vmul.f32 %v1103_v22, %v1103_v22 }
 0x9da   :  { %v1104_v3 = vsub.f32 %v1093_v18, %v1102_v24  ;;  %v1107_v26 = vsel %vm97_vm1, %v1105_v25, 0.0 }
 0x9db   :  { %1108 = vadd.xlane.f32.xlu0 %v1107_v26 }
 0x9dc   :  { %v1106_v27 = vmul.f32 %v1104_v3, %v1104_v3 }
 0x9de   :  { %v1110_v4 = vsel %vm97_vm1, %v1106_v27, 0.0 }
 0x9df   :  { %1111 = vadd.xlane.f32.xlu1 %v1110_v4 }
 0xa64   :  { %v1109_v30 = vpop.xlane.xlu0 %1108 }
 0xa65   :  { %v1113_v31 = vmul.f32 0.03125, %v1109_v30 }
 0xa67   :  { %v1115_v32 = vadd.f32 1e-05, %v1113_v31 }
 0xa68   :  { %v1112_v33 = vpop.xlane.xlu1 %1111 }
 0xa69   :  { %2664 = vrsqrt.f32 %v1115_v32  ;;  %v1114_v34 = vmul.f32 0.03125, %v1112_v33 }
 0xa6b   :  { %v1116_v35 = vadd.f32 1e-05, %v1114_v34 }
 0xa6d   :  { %2666 = vrsqrt.f32 %v1116_v35 }
 0xa76   :  { %v2665_v38 = vpop.eup %2664 }
 0xa77   :  { %v1119_v40 = vmul.f32 %v2665_v38, %v1103_v22 }
 0xa79   :  { %v1125_v42 = vmul.f32 %v1124_v14, %v1119_v40 }
 0xa7a   :  { %v2667_v10 = vpop.eup %2666 }
 0xa7b   :  { %v1120_v41 = vmul.f32 %v2667_v10, %v1104_v3  ;;  %v3074_v44 = vadd.f32 %v1130_v39, %v1125_v42 }
 0xa7d   :  { %v1126_v43 = vmul.f32 %v1124_v14, %v1120_v41 }
 0xa7f   :  { %v3076_v45 = vadd.f32 %v1130_v39, %v1126_v43 }
 0xa81   :  { %v1147_v46 = vpack.c.bf16 %v3076_v45, %v3074_v44 }
 0xa83   :  { %2495 = vmatmul.mubr.msk.bf16.vlgmr.msra.gmra.mxu0 %vm97_vm1, %v1147_v46 }
 0xa84   :  { %2506 = vmatprep.mubr.msk.bf16.mxu0 %vm2802_vm0, %v2801_v0 }
 0xb43   :  { %v1203_v48 = vpop.f32.mrf.mxu0 }
 0xb44   :  { %v1204_v49 = vadd.f32 %v2279_v47, %v1203_v48 }
 0xb45   :  { %v2496_v50 = vpop.f32.mrf.mxu0 }
 0xb46   :  { %v3086_v51 = vpack.c.bf16 %v1204_v49, %v1204_v49 }
 0xb47   :  { %v1206_v52 = vpop.f32.mrf.mxu0 }
 0xb48   :  { %v1207_v53 = vadd.f32 %v2279_v47, %v1206_v52  ;;  %1213 = vrot.lane.b32.xlu0 %v3086_v51, %s2803_s15 }
 0xb49   :  { %v2497_v54 = vpop.f32.mrf.mxu0 }
 0xb4a   :  { %v3090_v55 = vpack.c.bf16 %v1207_v53, %v1207_v53 }
 0xb4c   :  { %1326 = vrot.lane.b32.xlu0 %v3086_v51, %s2795_s24  ;;  %1262 = vrot.lane.b32.xlu1 %v3090_v55, %s2803_s15 }
 0xb50   :  { %1374 = vrot.lane.b32.xlu1 %v3090_v55, %s2795_s24 }
 0xbba   :  { %v1214_v56 = vpop.permute.xlu0 %1213 }
 0xbbb   :  { %v1219_v57 = vsel %vm147_vm2, %v1214_v56, 0 }
 0xbbc   :  { %2499 = vmatpush3.bf16.xpose.msra.mxu1 %v1219_v57 }
 0xbbd   :  { %2510 = vmatprep.subr.bf16.mxu1 %v2801_v0 }
 0xbbe   :  { %v1263_v58 = vpop.permute.xlu1 %1262  ;;  %v1327_v60 = vpop.permute.xlu0 %1326 }
 0xbbf   :  { %v1268_v59 = vsel %vm147_vm2, %v1263_v58, 0  ;;  %v1332_v61 = vsel %vm264_vm3, %v1327_v60, 0 }
 0xbc0   :  { %2505 = vmatpush3.bf16.xpose.msra.mxu0 %v1268_v59 }
 0xbc1   :  { %2516 = vmatprep.subr.bf16.mxu0 %v2801_v0 }
 0xbc2   :  { %v1375_v62 = vpop.permute.xlu1 %1374 }
 0xbc3   :  { %2501 = vmatmul.mubr.msk.bf16.vlgmr.msra.gmra.mxu1 %vm147_vm2, %v3086_v51  ;;  %v1380_v63 = vsel %vm264_vm3, %v1375_v62, 0 }
 0xbc4   :  { %2511 = vmatpush3.bf16.msra.mxu1 %v1332_v61  ;;  %2512 = vmatprep.mubr.msk.bf16.mxu1 %vm2802_vm0, %v2801_v0 }
 0xbc5   :  { %2522 = vmatprep.subr.bf16.mxu1 %v2801_v0 }
 0xbc7   :  { %2507 = vmatmul.mubr.msk.bf16.vlgmr.msra.gmra.mxu0 %vm147_vm2, %v3090_v55 }
 0xbc8   :  { %2517 = vmatpush3.bf16.msra.mxu0 %v1380_v63  ;;  %2518 = vmatprep.mubr.msk.bf16.mxu0 %vm2802_vm0, %v2801_v0 }
 0xbc9   :  { %2528 = vmatprep.subr.bf16.mxu0 %v2801_v0 }
 0xc83   :  { %v1255_v1 = vpop.f32.mrf.mxu1 }
 0xc84   :  { %v1310_v6 = vmul.f32 1.442695, %v1255_v1 }
 0xc85   :  { %v2502_v7 = vpop.f32.mrf.mxu1 }
 0xc86   :  { %2668 = vpow2.f32 %v1310_v6 }
 0xc87   :  { %v1258_v8 = vpop.f32.mrf.mxu1  ;;  %v1304_v9 = vpop.f32.mrf.mxu0 }
 0xc88   :  { %v1312_v11 = vmul.f32 1.442695, %v1304_v9 }
 0xc89   :  { %v2503_v12 = vpop.f32.mrf.mxu1  ;;  %v2508_v13 = vpop.f32.mrf.mxu0 }
 0xc8a   :  { %2670 = vpow2.f32 %v1312_v11 }
 0xc8b   :  { %v1307_v15 = vpop.f32.mrf.mxu0 }
 0xc8d   :  { %v2509_v16 = vpop.f32.mrf.mxu0 }
 0xc93   :  { %v2669_v17 = vpop.eup %2668 }
 0xc94   :  { %v1314_v18 = vsel %vm147_vm2, %v2669_v17, 0.0 }
 0xc95   :  { %1315 = vadd.xlane.f32.xlu1 %v1314_v18 }
 0xc97   :  { %v2671_v19 = vpop.eup %2670 }
 0xc98   :  { %v1317_v20 = vsel %vm147_vm2, %v2671_v19, 0.0 }
 0xc99   :  { %1318 = vadd.xlane.f32.xlu0 %v1317_v20 }
 0xca6   :  { %1426 = vrot.lane.b32.xlu1 %v3086_v51, %s2804_s16 }
 0xcaa   :  { %1424 = vrot.lane.b32.xlu1 %v3086_v51, %s2805_s17 }
 0xcae   :  { %1588 = vrot.lane.b32.xlu1 %v3090_v55, %s2806_s18 }
 0xcaf   :  { %1476 = vrot.lane.b32.xlu0 %v3090_v55, %s2804_s16 }
 0xcb3   :  { %1474 = vrot.lane.b32.xlu0 %v3090_v55, %s2805_s17 }
 0xcb7   :  { %1540 = vrot.lane.b32.xlu0 %v3086_v51, %s2806_s18 }
 0xd1e   :  { %v1316_v21 = vpop.xlane.xlu1 %1315 }
 0xd1f   :  { %2672 = vrcp.f32 %v1316_v21 }
 0xd22   :  { %v1319_v22 = vpop.xlane.xlu0 %1318  ;;  %v1427_v3 = vpop.permute.xlu1 %1426 }
 0xd23   :  { %2674 = vrcp.f32 %v1319_v22  ;;  %v1432_v28 = vsel %vm147_vm2, %v1427_v3, 0 }
 0xd26   :  { %v1477_v23 = vpop.permute.xlu0 %1476  ;;  %v1425_v31 = vpop.permute.xlu1 %1424 }
 0xd27   :  { %v1482_v32 = vsel %vm147_vm2, %v1477_v23, 0 }
 0xd2a   :  { %v1475_v4 = vpop.permute.xlu0 %1474  ;;  %v1589_v35 = vpop.permute.xlu1 %1588 }
 0xd2b   :  { %v1594_v38 = vsel %vm264_vm3, %v1589_v35, 0 }
 0xd2c   :  { %v2673_v24 = vpop.eup %2672 }
 0xd2d   :  { %v1322_v25 = vmul.f32 %v2673_v24, %v2669_v17 }
 0xd2e   :  { %v1541_v33 = vpop.permute.xlu0 %1540 }
 0xd2f   :  { %v1324_v26 = vpack.c.bf16 %v1322_v25, %v1322_v25  ;;  %v1546_v34 = vsel %vm264_vm3, %v1541_v33, 0 }
 0xd30   :  { %v2675_v27 = vpop.eup %2674 }
 0xd31   :  { %2513 = vmatmul.mubr.msk.bf16.vlgmr.msra.gmra.mxu1 %vm147_vm2, %v1324_v26  ;;  %v1323_v29 = vmul.f32 %v2675_v27, %v2671_v19 }
 0xd32   :  { %2523 = vmatpush3.bf16.xpose.msra.mxu1 %v1432_v28  ;;  %2524 = vmatprep.mubr.msk.bf16.mxu1 %vm2802_vm0, %v2801_v0 }
 0xd33   :  { %v1325_v30 = vpack.c.bf16 %v1323_v29, %v1323_v29  ;;  %2534 = vmatprep.subr.bf16.mxu1 %v2801_v0 }
 0xd35   :  { %2519 = vmatmul.mubr.msk.bf16.vlgmr.msra.gmra.mxu0 %vm147_vm2, %v1325_v30 }
 0xd36   :  { %2529 = vmatpush3.bf16.xpose.msra.mxu0 %v1482_v32  ;;  %2530 = vmatprep.mubr.msk.bf16.mxu0 %vm2802_vm0, %v2801_v0 }
 0xd37   :  { %2540 = vmatprep.subr.bf16.mxu0 %v2801_v0 }
 0xd39   :  { %2525 = vmatmul.mubr.msk.bf16.vlgmr.msra.gmra.mxu1 %vm147_vm2, %v1425_v31 }
 0xd3a   :  { %2535 = vmatpush3.bf16.msra.mxu1 %v1546_v34  ;;  %2536 = vmatprep.mubr.msk.bf16.mxu1 %vm2802_vm0, %v2801_v0 }
 0xd3b   :  { %2546 = vmatprep.subr.bf16.mxu1 %v2801_v0 }
 0xd3d   :  { %2531 = vmatmul.mubr.msk.bf16.vlgmr.msra.gmra.mxu0 %vm147_vm2, %v1475_v4 }
 0xd3e   :  { %2541 = vmatpush3.bf16.msra.mxu0 %v1594_v38  ;;  %2542 = vmatprep.mubr.msk.bf16.mxu0 %vm2802_vm0, %v2801_v0 }
 0xd3f   :  { %2552 = vmatprep.subr.bf16.mxu0 %v2801_v0 }
 0xdf1   :  { %v1368_v14 = vpop.f32.mrf.mxu1 }
 0xdf2   :  { %1422 = vst.msk [vmem:[#allocation2] sm:$0xff] %vm147_vm2, %v1368_v14 }
 0xdf3   :  { %v2514_v40 = vpop.f32.mrf.mxu1 }
 0xdf5   :  { %v1371_v10 = vpop.f32.mrf.mxu1  ;;  %v1416_v39 = vpop.f32.mrf.mxu0 }
 0xdf6   :  { %1423 = vst.msk [vmem:[#allocation2 + $0x8] sm:$0xff] %vm147_vm2, %v1416_v39 }
 0xdf7   :  { %v2515_v41 = vpop.f32.mrf.mxu1  ;;  %v2520_v42 = vpop.f32.mrf.mxu0 }
 0xdf9   :  { %v1419_v43 = vpop.f32.mrf.mxu0  ;;  %v1468_v46 = vpop.f32.mrf.mxu1 }
 0xdfa   :  { %v1524_v47 = vmul.f32 1.442695, %v1468_v46 }
 0xdfb   :  { %v2521_v48 = vpop.f32.mrf.mxu0  ;;  %v2526_v49 = vpop.f32.mrf.mxu1 }
 0xdfc   :  { %2676 = vpow2.f32 %v1524_v47 }
 0xdfd   :  { %v1471_v50 = vpop.f32.mrf.mxu1  ;;  %v1518_v52 = vpop.f32.mrf.mxu0 }
 0xdfe   :  { %v1526_v53 = vmul.f32 1.442695, %v1518_v52 }
 0xdff   :  { %v2527_v54 = vpop.f32.mrf.mxu1  ;;  %v2532_v56 = vpop.f32.mrf.mxu0 }
 0xe00   :  { %2678 = vpow2.f32 %v1526_v53 }
 0xe01   :  { %v1521_v57 = vpop.f32.mrf.mxu0 }
 0xe03   :  { %v2533_v58 = vpop.f32.mrf.mxu0 }
 0xe09   :  { %v2677_v59 = vpop.eup %2676 }
 0xe0a   :  { %v1528_v60 = vsel %vm147_vm2, %v2677_v59, 0.0 }
 0xe0b   :  { %1529 = vadd.xlane.f32.xlu1 %v1528_v60 }
 0xe0d   :  { %v2679_v61 = vpop.eup %2678 }
 0xe0e   :  { %v1531_v62 = vsel %vm147_vm2, %v2679_v61, 0.0 }
 0xe0f   :  { %1532 = vadd.xlane.f32.xlu0 %v1531_v62 }
 0xe1c   :  { %1648 = vrot.lane.b32.xlu1 %v3086_v51, %s2807_s19 }
 0xe20   :  { %1646 = vrot.lane.b32.xlu1 %v3086_v51, %s2808_s20 }
 0xe24   :  { %1810 = vrot.lane.b32.xlu1 %v3090_v55, %s2809_s21 }
 0xe25   :  { %1698 = vrot.lane.b32.xlu0 %v3090_v55, %s2807_s19 }
 0xe29   :  { %1696 = vrot.lane.b32.xlu0 %v3090_v55, %s2808_s20 }
 0xe2d   :  { %1762 = vrot.lane.b32.xlu0 %v3086_v51, %s2809_s21 }
 0xe94   :  { %v1530_v63 = vpop.xlane.xlu1 %1529 }
 0xe95   :  { %2680 = vrcp.f32 %v1530_v63 }
 0xe98   :  { %v1533_v1 = vpop.xlane.xlu0 %1532  ;;  %v1649_v9 = vpop.permute.xlu1 %1648 }
 0xe99   :  { %2682 = vrcp.f32 %v1533_v1  ;;  %v1654_v15 = vsel %vm147_vm2, %v1649_v9, 0 }
 0xe9c   :  { %v1699_v6 = vpop.permute.xlu0 %1698  ;;  %v1647_v18 = vpop.permute.xlu1 %1646 }
 0xe9d   :  { %v1704_v19 = vsel %vm147_vm2, %v1699_v6, 0 }
 0xea0   :  { %v1697_v13 = vpop.permute.xlu0 %1696  ;;  %v1811_v22 = vpop.permute.xlu1 %1810 }
 0xea1   :  { %v1816_v23 = vsel %vm264_vm3, %v1811_v22, 0 }
 0xea2   :  { %v2681_v7 = vpop.eup %2680 }
 0xea3   :  { %v1536_v8 = vmul.f32 %v2681_v7, %v2677_v59 }
 0xea4   :  { %v1763_v20 = vpop.permute.xlu0 %1762 }
 0xea5   :  { %v1538_v11 = vpack.c.bf16 %v1536_v8, %v1536_v8  ;;  %v1768_v21 = vsel %vm264_vm3, %v1763_v20, 0 }
 0xea6   :  { %v2683_v12 = vpop.eup %2682 }
 0xea7   :  { %2537 = vmatmul.mubr.msk.bf16.vlgmr.msra.gmra.mxu1 %vm147_vm2, %v1538_v11  ;;  %v1537_v16 = vmul.f32 %v2683_v12, %v2679_v61 }
 0xea8   :  { %2547 = vmatpush3.bf16.xpose.msra.mxu1 %v1654_v15  ;;  %2548 = vmatprep.mubr.msk.bf16.mxu1 %vm2802_vm0, %v2801_v0 }
 0xea9   :  { %v1539_v17 = vpack.c.bf16 %v1537_v16, %v1537_v16  ;;  %2558 = vmatprep.subr.bf16.mxu1 %v2801_v0 }
 0xeab   :  { %2543 = vmatmul.mubr.msk.bf16.vlgmr.msra.gmra.mxu0 %vm147_vm2, %v1539_v17 }
 0xeac   :  { %2553 = vmatpush3.bf16.xpose.msra.mxu0 %v1704_v19  ;;  %2554 = vmatprep.mubr.msk.bf16.mxu0 %vm2802_vm0, %v2801_v0 }
 0xead   :  { %2564 = vmatprep.subr.bf16.mxu0 %v2801_v0 }
 0xeaf   :  { %2549 = vmatmul.mubr.msk.bf16.vlgmr.msra.gmra.mxu1 %vm147_vm2, %v1647_v18 }
 0xeb0   :  { %2559 = vmatpush3.bf16.msra.mxu1 %v1768_v21  ;;  %2560 = vmatprep.mubr.msk.bf16.mxu1 %vm2802_vm0, %v2801_v0 }
 0xeb1   :  { %2570 = vmatprep.subr.bf16.mxu1 %v2801_v0 }
 0xeb3   :  { %2555 = vmatmul.mubr.msk.bf16.vlgmr.msra.gmra.mxu0 %vm147_vm2, %v1697_v13 }
 0xeb4   :  { %2565 = vmatpush3.bf16.msra.mxu0 %v1816_v23  ;;  %2566 = vmatprep.mubr.msk.bf16.mxu0 %vm2802_vm0, %v2801_v0 }
 0xeb5   :  { %2576 = vmatprep.subr.bf16.mxu0 %v2801_v0 }
 0xf67   :  { %v3184_v24 = vpop.f32.mrf.mxu1 }
 0xf69   :  { %v2538_v25 = vpop.f32.mrf.mxu1 }
 0xf6b   :  { %v1585_v3 = vpop.f32.mrf.mxu1  ;;  %v3186_v26 = vpop.f32.mrf.mxu0 }
 0xf6d   :  { %v2539_v27 = vpop.f32.mrf.mxu1  ;;  %v2544_v4 = vpop.f32.mrf.mxu0 }
 0xf6f   :  { %v1633_v28 = vpop.f32.mrf.mxu0  ;;  %v1690_v29 = vpop.f32.mrf.mxu1 }
 0xf70   :  { %v1746_v30 = vmul.f32 1.442695, %v1690_v29 }
 0xf71   :  { %v2545_v31 = vpop.f32.mrf.mxu0  ;;  %v2550_v32 = vpop.f32.mrf.mxu1 }
 0xf72   :  { %2684 = vpow2.f32 %v1746_v30 }
 0xf73   :  { %v1693_v33 = vpop.f32.mrf.mxu1  ;;  %v1740_v34 = vpop.f32.mrf.mxu0 }
 0xf74   :  { %v1748_v35 = vmul.f32 1.442695, %v1740_v34 }
 0xf75   :  { %v2551_v38 = vpop.f32.mrf.mxu1  ;;  %v2556_v14 = vpop.f32.mrf.mxu0 }
 0xf76   :  { %2686 = vpow2.f32 %v1748_v35 }
 0xf77   :  { %v1743_v40 = vpop.f32.mrf.mxu0 }
 0xf79   :  { %v2557_v10 = vpop.f32.mrf.mxu0 }
 0xf7a   :  { %v2630_v10 = vld [vmem:[#allocation8 + $0x18] sm:$0xff]  }
 0xf7f   :  { %v2685_v39 = vpop.eup %2684 }
 0xf80   :  { %v1750_v41 = vsel %vm147_vm2, %v2685_v39, 0.0 }
 0xf81   :  { %1751 = vadd.xlane.f32.xlu1 %v1750_v41 }
 0xf83   :  { %v2687_v42 = vpop.eup %2686 }
 0xf84   :  { %v1753_v43 = vsel %vm147_vm2, %v2687_v42, 0.0 }
 0xf85   :  { %1754 = vadd.xlane.f32.xlu0 %v1753_v43 }
 0xf92   :  { %1870 = vrot.lane.b32.xlu1 %v3086_v51, %s2810_s22 }
 0xf96   :  { %1868 = vrot.lane.b32.xlu1 %v3086_v51, %s2811_s23 }
 0xf9b   :  { %1920 = vrot.lane.b32.xlu0 %v3090_v55, %s2810_s22 }
 0xf9f   :  { %1918 = vrot.lane.b32.xlu0 %v3090_v55, %s2811_s23 }
0x100a   :  { %v1752_v46 = vpop.xlane.xlu1 %1751 }
0x100b   :  { %2688 = vrcp.f32 %v1752_v46 }
0x100e   :  { %v1755_v47 = vpop.xlane.xlu0 %1754  ;;  %v1871_v50 = vpop.permute.xlu1 %1870 }
0x100f   :  { %2690 = vrcp.f32 %v1755_v47  ;;  %v1876_v54 = vsel %vm147_vm2, %v1871_v50, 0 }
0x1012   :  { %v1921_v57 = vpop.permute.xlu0 %1920  ;;  %v1869_v60 = vpop.permute.xlu1 %1868 }
0x1013   :  { %v1926_v59 = vsel %vm147_vm2, %v1921_v57, 0  ;;  %v2278_v57 = vld [vmem:[%s3277_s4 + $0x4] sm:$0x7] }
0x1016   :  { %v1919_v61 = vpop.permute.xlu0 %1918 }
0x1018   :  { %v2689_v48 = vpop.eup %2688 }
0x1019   :  { %v1758_v49 = vmul.f32 %v2689_v48, %v2685_v39  ;;  %v2631_v39 = vld [vmem:[#allocation8 + $0x10] sm:$0xff]  }
0x101b   :  { %v1760_v52 = vpack.c.bf16 %v1758_v49, %v1758_v49 }
0x101c   :  { %v2691_v53 = vpop.eup %2690 }
0x101d   :  { %2561 = vmatmul.mubr.msk.bf16.vlgmr.msra.gmra.mxu1 %vm147_vm2, %v1760_v52  ;;  %v1759_v56 = vmul.f32 %v2691_v53, %v2687_v42 }
0x101e   :  { %2571 = vmatpush3.bf16.xpose.msra.mxu1 %v1876_v54  ;;  %2572 = vmatprep.mubr.msk.bf16.mxu1 %vm2802_vm0, %v2801_v0 }
0x101f   :  { %v1761_v58 = vpack.c.bf16 %v1759_v56, %v1759_v56  ;;  %2582 = vmatprep.subr.bf16.mxu1 %v2801_v0 }
0x1021   :  { %2567 = vmatmul.mubr.msk.bf16.vlgmr.msra.gmra.mxu0 %vm147_vm2, %v1761_v58  ;;  %v2154_v58 = vrot.slane %v2278_v57, %v3053_v5 }
0x1022   :  { %2577 = vmatpush3.bf16.xpose.msra.mxu0 %v1926_v59  ;;  %2578 = vmatprep.mubr.msk.bf16.mxu0 %vm2802_vm0, %v2801_v0 }
0x1023   :  { %2588 = vmatprep.subr.bf16.mxu0 %v2801_v0 }
0x1025   :  { %2573 = vmatmul.mubr.msk.bf16.vlgmr.msra.gmra.mxu1 %vm147_vm2, %v1869_v60 }
0x1026   :  { %2584 = vmatprep.mubr.msk.bf16.mxu1 %vm2802_vm0, %v2801_v0 }
0x1029   :  { %2579 = vmatmul.mubr.msk.bf16.vlgmr.msra.gmra.mxu0 %vm147_vm2, %v1919_v61 }
0x102a   :  { %2590 = vmatprep.mubr.msk.bf16.mxu0 %vm2802_vm0, %v2801_v0 }
0x10dd   :  { %v1804_v62 = vpop.f32.mrf.mxu1 }
0x10df   :  { %v2562_v63 = vpop.f32.mrf.mxu1 }
0x10e1   :  { %v1807_v1 = vpop.f32.mrf.mxu1  ;;  %v1852_v6 = vpop.f32.mrf.mxu0 }
0x10e3   :  { %v2563_v7 = vpop.f32.mrf.mxu1  ;;  %v2568_v8 = vpop.f32.mrf.mxu0 }
0x10e5   :  { %v1855_v9 = vpop.f32.mrf.mxu0  ;;  %v1912_v11 = vpop.f32.mrf.mxu1 }
0x10e6   :  { %v1968_v12 = vmul.f32 1.442695, %v1912_v11 }
0x10e7   :  { %v2569_v13 = vpop.f32.mrf.mxu0  ;;  %v2574_v15 = vpop.f32.mrf.mxu1 }
0x10e8   :  { %2692 = vpow2.f32 %v1968_v12 }
0x10e9   :  { %v1915_v16 = vpop.f32.mrf.mxu1  ;;  %v1962_v17 = vpop.f32.mrf.mxu0 }
0x10ea   :  { %v1970_v18 = vmul.f32 1.442695, %v1962_v17 }
0x10eb   :  { %v2575_v19 = vpop.f32.mrf.mxu1  ;;  %v2580_v20 = vpop.f32.mrf.mxu0 }
0x10ec   :  { %2694 = vpow2.f32 %v1970_v18 }
0x10ed   :  { %v1965_v21 = vpop.f32.mrf.mxu0 }
0x10ef   :  { %v2581_v22 = vpop.f32.mrf.mxu0 }
0x10f5   :  { %v2693_v23 = vpop.eup %2692 }
0x10f6   :  { %v1972_v25 = vsel %vm147_vm2, %v2693_v23, 0.0 }
0x10f7   :  { %1973 = vadd.xlane.f32.xlu1 %v1972_v25 }
0x10f9   :  { %v2695_v3 = vpop.eup %2694 }
0x10fa   :  { %v1975_v27 = vsel %vm147_vm2, %v2695_v3, 0.0 }
0x10fb   :  { %1976 = vadd.xlane.f32.xlu0 %v1975_v27  ;;  %v2186_v27 = vrot.slane %v2278_v57, %v3068_v37 }
0x1108   :  { %2032 = vrot.lane.b32.xlu1 %v3090_v55, %s2812_s25 }
0x110c   :  { %1638 = vrot.lane.b32.xlu1 %v3184_v24, %s2799_s8 }
0x1110   :  { %1860 = vrot.lane.b32.xlu1 %v1804_v62, %s2813_s26 }
0x1111   :  { %1984 = vrot.lane.b32.xlu0 %v3086_v51, %s2812_s25 }
0x1115   :  { %1640 = vrot.lane.b32.xlu0 %v3186_v26, %s2799_s8 }
0x1119   :  { %1862 = vrot.lane.b32.xlu0 %v1852_v6, %s2813_s26 }
0x1180   :  { %v1974_v4 = vpop.xlane.xlu1 %1973 }
0x1181   :  { %2696 = vrcp.f32 %v1974_v4 }
0x1184   :  { %v2033_v28 = vpop.permute.xlu1 %2032  ;;  %v1977_v29 = vpop.xlane.xlu0 %1976 }
0x1185   :  { %v2038_v30 = vsel %vm264_vm3, %v2033_v28, 0  ;;  %2698 = vrcp.f32 %v1977_v29  ;;  %v2192_v29 = vrot.slane %v2278_v57, %v1129_v36 }
0x1186   :  { %2589 = vmatpush3.bf16.msra.mxu0 %v2038_v30 }
0x1188   :  { %v1639_v55 = vpop.permute.xlu1 %1638  ;;  %v1985_v24 = vpop.permute.xlu0 %1984 }
0x1189   :  { %1644 = vst.msk [vmem:[#allocation2] sm:$0xff] %vm578_vm4, %v1639_v55  ;;  %v1990_v31 = vsel %vm264_vm3, %v1985_v24, 0 }
0x118a   :  { %2583 = vmatpush3.bf16.msra.mxu1 %v1990_v31 }
0x118b   :  { %2594 = vmatprep.subr.bf16.mxu1 %v2801_v0 }
0x118c   :  { %v1861_v51 = vpop.permute.xlu1 %1860  ;;  %v1641_v26 = vpop.permute.xlu0 %1640 }
0x118d   :  { %1866 = vst.msk [vmem:[#allocation2] sm:$0xff] %vm801_vm5, %v1861_v51 }
0x118e   :  { %1645 = vst.msk [vmem:[#allocation2 + $0x8] sm:$0xff] %vm578_vm4, %v1641_v26  ;;  %v2697_v32 = vpop.eup %2696 }
0x118f   :  { %v1980_v33 = vmul.f32 %v2697_v32, %v2693_v23 }
0x1190   :  { %v1863_v34 = vpop.permute.xlu0 %1862 }
0x1191   :  { %1867 = vst.msk [vmem:[#allocation2 + $0x8] sm:$0xff] %vm801_vm5, %v1863_v34  ;;  %v1982_v35 = vpack.c.bf16 %v1980_v33, %v1980_v33 }
0x1192   :  { %v2699_v38 = vpop.eup %2698 }
0x1193   :  { %2585 = vmatmul.mubr.msk.bf16.vlgmr.msra.gmra.mxu1 %vm147_vm2, %v1982_v35  ;;  %v1981_v14 = vmul.f32 %v2699_v38, %v2695_v3 }
0x1194   :  { %2598 = vmatprep.mubr.msk.bf16.mxu1 %vm2802_vm0, %v2801_v0  ;;  %2595 = vmatpush3.bf16.msra.mxu1 %v2630_v10 }
0x1195   :  { %v1983_v40 = vpack.c.bf16 %v1981_v14, %v1981_v14  ;;  %2596 = vmatprep.subr.bf16.mxu1 %v2801_v0 }
0x1197   :  { %2591 = vmatmul.mubr.msk.bf16.vlgmr.msra.gmra.mxu0 %vm147_vm2, %v1983_v40 }
0x1198   :  { %2597 = vmatpush3.bf16.msra.mxu1 %v2631_v39 }
0x1253   :  { %v2026_v41 = vpop.f32.mrf.mxu1 }
0x1254   :  { %2082 = vrot.lane.b32.xlu1 %v2026_v41, %s2814_s27 }
0x1255   :  { %v2586_v42 = vpop.f32.mrf.mxu1 }
0x1257   :  { %v2029_v43 = vpop.f32.mrf.mxu1  ;;  %v2074_v46 = vpop.f32.mrf.mxu0 }
0x1258   :  { %2084 = vrot.lane.b32.xlu0 %v2074_v46, %s2814_s27 }
0x1259   :  { %v2587_v47 = vpop.f32.mrf.mxu1  ;;  %v2592_v48 = vpop.f32.mrf.mxu0 }
0x125b   :  { %v2077_v49 = vpop.f32.mrf.mxu0 }
0x125d   :  { %v2593_v50 = vpop.f32.mrf.mxu0 }
0x125e   :  { %v2195_v50 = vld [vmem:[%s3278_s5] sm:$0x3]  ;;  %s2768_s5 = scalar_lea.vmem %s2242_s11, 256 }
0x125f   :  { %p2769_p1 = scmp.ne.s32.totalorder %s2242_s11, %s2768_s5  ;;  %p2774_p3 = scmp.lt.s32.totalorder %s2768_s5, %s2768_s5 }
0x1261   :  { %p2775_p4 = por %p2774_p3, %p2773_p2 }
0x1263   :  { %p2776_p5 = pnand %p2775_p4, %p2769_p1 }
0x12c6   :  { %v2083_v52 = vpop.permute.xlu1 %2082 }
0x12c7   :  { %2088 = vst.msk [vmem:[#allocation2] sm:$0xff] %vm1024_vm6, %v2083_v52  ;;  %v2225_v52 = vrot.slane %v2195_v50, %v3053_v5 }
0x12ca   :  { %v2085_v53 = vpop.permute.xlu0 %2084 }
0x12cb   :  { %2089 = vst.msk [vmem:[#allocation2 + $0x8] sm:$0xff] %vm1024_vm6, %v2085_v53 }
0x12ce   :  { %v2090_v0 = vld [vmem:[#allocation2] sm:$0xff] }
0x12d2   :  { %v2091_v54 = vld [vmem:[#allocation2 + $0x8] sm:$0xff] }
0x12d3   :  { %v2092_v56 = vpack.c.bf16 %v2091_v54, %v2090_v0  ;;  %v2231_v54 = vrot.slane %v2195_v50, %v3068_v37 }
0x12d5   :  { %2599 = vmatmul.mubr.msk.bf16.vlgmr.msra.gmra.mxu1 %vm97_vm1, %v2092_v56 }
0x1395   :  { %v2142_v59 = vpop.f32.mrf.mxu1 }
0x1396   :  { %v2149_v60 = vadd.f32 %v2142_v59, %v3074_v44 }
0x1397   :  { %v2600_v61 = vpop.f32.mrf.mxu1 }
0x1398   :  { %v2155_v62 = vadd.f32 %v2154_v58, %v2149_v60 }
0x1399   :  { %v2145_v63 = vpop.f32.mrf.mxu1 }
0x139a   :  { %v2150_v1 = vadd.f32 %v2145_v63, %v3076_v45  ;;  %v2157_v6 = vsel %vm97_vm1, %v2155_v62, 0.0 }
0x139b   :  { %2158 = vadd.xlane.f32.xlu1 %v2157_v6  ;;  %v2601_v7 = vpop.f32.mrf.mxu1 }
0x139c   :  { %v2156_v8 = vadd.f32 %v2154_v58, %v2150_v1 }
0x139e   :  { %v2160_v9 = vsel %vm97_vm1, %v2156_v8, 0.0 }
0x139f   :  { %2161 = vadd.xlane.f32.xlu0 %v2160_v9 }
0x1424   :  { %v2159_v11 = vpop.xlane.xlu1 %2158 }
0x1425   :  { %v2163_v12 = vmul.f32 0.03125, %v2159_v11 }
0x1427   :  { %v2165_v13 = vsub.f32 %v2155_v62, %v2163_v12 }
0x1428   :  { %v2162_v15 = vpop.xlane.xlu0 %2161 }
0x1429   :  { %v2164_v16 = vmul.f32 0.03125, %v2162_v15  ;;  %v2167_v17 = vmul.f32 %v2165_v13, %v2165_v13 }
0x142b   :  { %v2166_v44 = vsub.f32 %v2156_v8, %v2164_v16  ;;  %v2169_v18 = vsel %vm97_vm1, %v2167_v17, 0.0 }
0x142c   :  { %2170 = vadd.xlane.f32.xlu0 %v2169_v18 }
0x142d   :  { %v2168_v19 = vmul.f32 %v2166_v44, %v2166_v44 }
0x142f   :  { %v2172_v45 = vsel %vm97_vm1, %v2168_v19, 0.0 }
0x1430   :  { %2173 = vadd.xlane.f32.xlu1 %v2172_v45 }
0x14b5   :  { %v2171_v20 = vpop.xlane.xlu0 %2170 }
0x14b6   :  { %v2175_v21 = vmul.f32 0.03125, %v2171_v20 }
0x14b8   :  { %v2177_v22 = vadd.f32 1e-05, %v2175_v21 }
0x14b9   :  { %v2174_v23 = vpop.xlane.xlu1 %2173 }
0x14ba   :  { %2700 = vrsqrt.f32 %v2177_v22  ;;  %v2176_v25 = vmul.f32 0.03125, %v2174_v23 }
0x14bc   :  { %v2178_v3 = vadd.f32 1e-05, %v2176_v25 }
0x14be   :  { %2702 = vrsqrt.f32 %v2178_v3 }
0x14c7   :  { %v2701_v4 = vpop.eup %2700 }
0x14c8   :  { %v2181_v28 = vmul.f32 %v2701_v4, %v2165_v13 }
0x14ca   :  { %v2187_v30 = vmul.f32 %v2186_v27, %v2181_v28 }
0x14cb   :  { %v2703_v55 = vpop.eup %2702 }
0x14cc   :  { %v2193_v24 = vadd.f32 %v2192_v29, %v2187_v30  ;;  %v2182_v31 = vmul.f32 %v2703_v55, %v2166_v44 }
0x14ce   :  { %v2196_v51 = vsel %vm97_vm1, %v2193_v24, 0.0  ;;  %v2188_v26 = vmul.f32 %v2186_v27, %v2182_v31 }
0x14cf   :  { %2197 = vadd.xlane.f32.xlu0 %v2196_v51 }
0x14d0   :  { %v2194_v32 = vadd.f32 %v2192_v29, %v2188_v26 }
0x14d2   :  { %v2199_v33 = vsel %vm97_vm1, %v2194_v32, 0.0 }
0x14d3   :  { %2200 = vadd.xlane.f32.xlu1 %v2199_v33 }
0x1558   :  { %v2198_v34 = vpop.xlane.xlu0 %2197 }
0x1559   :  { %v2202_v35 = vmul.f32 0.03125, %v2198_v34 }
0x155b   :  { %v2204_v38 = vsub.f32 %v2193_v24, %v2202_v35 }
0x155c   :  { %v2201_v14 = vpop.xlane.xlu1 %2200 }
0x155d   :  { %v2203_v40 = vmul.f32 0.03125, %v2201_v14  ;;  %v2206_v10 = vmul.f32 %v2204_v38, %v2204_v38 }
0x155f   :  { %v2205_v2 = vsub.f32 %v2194_v32, %v2203_v40  ;;  %v2208_v36 = vsel %vm97_vm1, %v2206_v10, 0.0 }
0x1560   :  { %2209 = vadd.xlane.f32.xlu0 %v2208_v36 }
0x1561   :  { %v2207_v39 = vmul.f32 %v2205_v2, %v2205_v2 }
0x1563   :  { %v2211_v41 = vsel %vm97_vm1, %v2207_v39, 0.0 }
0x1564   :  { %2212 = vadd.xlane.f32.xlu1 %v2211_v41 }
0x15e9   :  { %v2210_v42 = vpop.xlane.xlu0 %2209 }
0x15ea   :  { %v2214_v43 = vmul.f32 0.03125, %v2210_v42 }
0x15ec   :  { %v2216_v46 = vadd.f32 1e-05, %v2214_v43 }
0x15ed   :  { %v2213_v47 = vpop.xlane.xlu1 %2212 }
0x15ee   :  { %2704 = vrsqrt.f32 %v2216_v46  ;;  %v2215_v48 = vmul.f32 0.03125, %v2213_v47 }
0x15f0   :  { %v2217_v49 = vadd.f32 1e-05, %v2215_v48 }
0x15f2   :  { %2706 = vrsqrt.f32 %v2217_v49 }
0x15fb   :  { %v2705_v53 = vpop.eup %2704 }
0x15fc   :  { %v2220_v0 = vmul.f32 %v2705_v53, %v2204_v38 }
0x15fe   :  { %v2226_v56 = vmul.f32 %v2225_v52, %v2220_v0 }
0x15ff   :  { %v2707_v57 = vpop.eup %2706 }
0x1600   :  { %v2221_v58 = vmul.f32 %v2707_v57, %v2205_v2  ;;  %v2232_v59 = vadd.f32 %v2231_v54, %v2226_v56 }
0x1602   :  { %v2227_v60 = vmul.f32 %v2225_v52, %v2221_v58  ;;  %2234 = vst.msk [vmem:[#allocation9] sm:$0xff] %vm97_vm1, %v2232_v59 }
0x1604   :  { %v2233_v61 = vadd.f32 %v2231_v54, %v2227_v60 }
0x1606   :  { %2235 = vst.msk [vmem:[#allocation9 + $0x8] sm:$0xff] %vm97_vm1, %v2233_v61 }
0x1607   :  { %2779 = shalt.err (!%p2776_p5)
}
0x1608   :  { %2247 = dma.vmem_to_hbm [thread:$0]  %s2242_s11, 256, %s3279_s6, [#allocation5], %s2798_s7, %s2798_s7, %s2799_s8  }
0x1609   :  { %2792 = dma.done.wait [#allocation5], 256  }
0x160a   :  { %2793 = vsyncadd [#allocation5], 4294967040 }
0x160b   :  { %2251 = vsyncpa [#allocation4], 1 }
0x160c   :  { %2252 = vsyncpa [#allocation7], 1 }
0x160d   :  { %2253 = vsyncpa [#allocation5], 1 }

</bundles_post_ra>
